<compile_context>
chip_gen: v7x
topology: tpu7x:2x2x1
jax: 0.10.0
libtpu: 0.0.40
codegen_flags: <defaults>
</compile_context>

<pallas_src>
import functools

import jax
import jax.numpy as jnp
from jax.experimental import pallas as pl
from jax.experimental.pallas import tpu as pltpu

HIDDEN = 256          # hidden width of both Linear(·,256) layers
NEG_SLOPE = 0.2       # LeakyReLU negative slope


def _round_up(x, m):
    return ((x + m - 1) // m) * m


def _discriminator_kernel(x_ref, w1_ref, b1_ref, w2_ref, b2_ref,
                          w3_ref, b3_ref, o_ref):
    """One (TB, D) batch tile through the whole MLP. Weights resident in VMEM."""
    # x arrives f32 from HBM; cast to bf16 in-kernel (cheaper than a wrapper pass).
    x = x_ref[...].astype(jnp.bfloat16)                               # (TB, D)

    # Linear(D -> 256) + LeakyReLU(0.2): bf16 MXU matmul, f32 accumulate/elementwise.
    h = jnp.dot(x, w1_ref[...], preferred_element_type=jnp.float32) + b1_ref[...]
    h = jnp.maximum(h, NEG_SLOPE * h)                                 # (TB, 256) f32

    # Linear(256 -> 256) + LeakyReLU(0.2)
    h = jnp.dot(h.astype(jnp.bfloat16), w2_ref[...],
                preferred_element_type=jnp.float32) + b2_ref[...]
    h = jnp.maximum(h, NEG_SLOPE * h)                                 # (TB, 256) f32

    # Linear(256 -> 1) + Sigmoid: contract w3_row (1, 256) with h's feature dim so the
    # logits come out as a single lane-dense (1, TB) row -> no (TB, 128) padded block,
    # ~128x less output traffic, sigmoid only over TB values.
    z = jax.lax.dot_general(
        w3_ref[...], h.astype(jnp.bfloat16),
        dimension_numbers=(((1,), (1,)), ((), ())),
        preferred_element_type=jnp.float32)                           # (1, TB) f32
    o_ref[0] = jax.nn.sigmoid(z + b3_ref[0])


def _pick_tile(batch, tb):
    """Batch tile height: multiple of 8, no larger than the (rounded) batch, and split
    into >=2 tiles when possible so both v7x TensorCores get work."""
    tb = min(tb, _round_up(batch, 8))
    if batch >= 16 and pl.cdiv(batch, tb) < 2:
        tb = _round_up(pl.cdiv(batch, 2), 8)
    return max(tb, 8)


def _vmem_budget_bytes(tb, d):
    """Approximate VMEM footprint (with lane/sublane padding) for headroom sizing."""
    bf16, f32 = 2, 4
    d_lanes = _round_up(d, 128)                          # x tile is lane-padded in VMEM
    x_bytes = 2 * tb * d_lanes * f32                     # double-buffered f32 input tile
    out_bytes = 2 * 8 * _round_up(tb, 128) * f32         # double-buffered (1,1,TB) output
    w_bytes = 2 * (_round_up(d, 16) * HIDDEN             # W1 (bf16, sublane-padded)
                   + HIDDEN * HIDDEN                     # W2
                   + 16 * HIDDEN) * bf16                 # W3 row (sublane-padded)
    b_bytes = 2 * 2 * 8 * HIDDEN * f32                   # b1, b2 padded to 8 sublanes
    return x_bytes + out_bytes + w_bytes + b_bytes


@functools.partial(jax.jit, static_argnames=("tb",))
def discriminator_forward(x_nchw, params, tb=256):
    """x_nchw: (B, C, H, W) float32. Returns (B, 1) float32."""
    B = x_nchw.shape[0]
    x = x_nchw.reshape(B, -1)                            # flatten(start_dim=1); stays f32
    D = x.shape[1]
    w1, b1, w2, b2, w3, b3 = params

    tb = _pick_tile(B, tb)
    num_tiles = pl.cdiv(B, tb)
    pB = num_tiles * tb
    if pB != B:
        # TODO(synk): a clamped last-block index_map (duplicate-computing a few rows)
        # would avoid this extra HBM pass over x for pad-triggering batch sizes.
        x = jnp.pad(x, ((0, pB - B), (0, 0)))

    # bf16 matmul operands (halves weight DMA/VMEM, 2x MXU rate on v6e/v7x); f32 biases.
    w1b = w1.astype(jnp.bfloat16)
    w2b = w2.astype(jnp.bfloat16)
    w3r = w3.reshape(1, -1).astype(jnp.bfloat16)         # (1, 256) row
    b1f = b1.astype(jnp.float32)
    b2f = b2.astype(jnp.float32)
    b3s = b3.reshape(1).astype(jnp.float32)              # scalar bias, lives in SMEM

    flops = 2 * pB * (D * HIDDEN + HIDDEN * HIDDEN + HIDDEN) + 4 * pB * HIDDEN + 4 * pB
    bytes_accessed = (pB * D * 4                                     # x (f32, read once)
                      + (D * HIDDEN + HIDDEN * HIDDEN + HIDDEN) * 2  # bf16 weights
                      + (2 * HIDDEN + 1) * 4                         # biases
                      + pB * 4)                                      # compact output

    out_tiles = pl.pallas_call(
        _discriminator_kernel,
        out_shape=jax.ShapeDtypeStruct((num_tiles, 1, tb), jnp.float32),
        grid=(num_tiles,),
        in_specs=[
            pl.BlockSpec((tb, D), lambda i: (i, 0)),            # x: batch-tiled, f32
            pl.BlockSpec((D, HIDDEN), lambda i: (0, 0)),        # W1: resident
            pl.BlockSpec((1, HIDDEN), lambda i: (0, 0)),        # b1
            pl.BlockSpec((HIDDEN, HIDDEN), lambda i: (0, 0)),   # W2
            pl.BlockSpec((1, HIDDEN), lambda i: (0, 0)),        # b2
            pl.BlockSpec((1, HIDDEN), lambda i: (0, 0)),        # W3 row
            pl.BlockSpec(memory_space=pltpu.MemorySpace.SMEM),  # b3 scalar
        ],
        out_specs=pl.BlockSpec((1, 1, tb), lambda i: (i, 0, 0)),
        compiler_params=pltpu.CompilerParams(
            dimension_semantics=("parallel",),                  # megacore shard on v7x
            vmem_limit_bytes=_vmem_budget_bytes(tb, D) + (16 << 20),
        ),
        cost_estimate=pl.CostEstimate(
            flops=flops, transcendentals=pB, bytes_accessed=bytes_accessed),
    )(x, w1b, b1f, w2b, b2f, w3r, b3s)

    # (num_tiles, 1, tb) -> (pB, 1); drop batch-padding rows.
    return out_tiles.reshape(pB, 1)[:B]


def init_params(key, in_features, hidden=HIDDEN):
    """kaiming_normal_ weights (fan_in, gain=sqrt(2)) + zero bias, like the module's
    init_params().  Weights are stored (in_features, out_features) — the transpose of
    nn.Linear.weight — so the kernel computes x @ W directly."""
    k1, k2, k3 = jax.random.split(key, 3)

    def kaiming(k, fan_in, fan_out):
        std = (2.0 / fan_in) ** 0.5
        return jax.random.normal(k, (fan_in, fan_out), dtype=jnp.float32) * std

    w1 = kaiming(k1, in_features, hidden)
    b1 = jnp.zeros((1, hidden), dtype=jnp.float32)
    w2 = kaiming(k2, hidden, hidden)
    b2 = jnp.zeros((1, hidden), dtype=jnp.float32)
    w3 = kaiming(k3, hidden, 1)
    b3 = jnp.zeros((1, 1), dtype=jnp.float32)
    return (w1, b1, w2, b2, w3, b3)


def reference_forward(x_nchw, params):
    """Pure-JAX f32 reference for correctness check."""
    w1, b1, w2, b2, w3, b3 = params
    x = x_nchw.reshape(x_nchw.shape[0], -1)
    h = x @ w1 + b1
    h = jnp.where(h > 0, h, NEG_SLOPE * h)
    h = h @ w2 + b2
    h = jnp.where(h > 0, h, NEG_SLOPE * h)
    z = h @ w3 + b3
    return jax.nn.sigmoid(z)


if __name__ == "__main__":
    # Module default input_shape = [C, H, W] = [1, 28, 28] -> D = 784.
    # B = 500 exercises a multi-tile grid (2 tiles of 256) plus batch padding.
    B, C, H, W = 500, 1, 28, 28
    D = C * H * W

    key = jax.random.PRNGKey(0)
    kx, kp = jax.random.split(key)

    x = jax.random.normal(kx, (B, C, H, W), dtype=jnp.float32)
    params = init_params(kp, D, hidden=HIDDEN)

    out = discriminator_forward(x, params)
    out = jax.block_until_ready(out)

    ref = reference_forward(x, params)
    assert out.shape == (B, 1), out.shape
    # Matmul operands are bf16 (f32 accumulation); sigmoid outputs live in [0, 1],
    # so an absolute tolerance of 2e-2 comfortably covers the bf16 rounding.
    assert jnp.allclose(out, ref, atol=2e-2, rtol=0.0), float(jnp.max(jnp.abs(out - ref)))

    print("KERNEL_OK")
</pallas_src>

<mosaic_0001>
module attributes {stable_mosaic.version = 11 : i64} {
  func.func @_discriminator_kernel(%arg0: i32, %arg1: memref<256x784xf32, #tpu.memory_space<vmem>>, %arg2: memref<784x256xbf16, #tpu.memory_space<vmem>>, %arg3: memref<1x256xf32, #tpu.memory_space<vmem>>, %arg4: memref<256x256xbf16, #tpu.memory_space<vmem>>, %arg5: memref<1x256xf32, #tpu.memory_space<vmem>>, %arg6: memref<1x256xbf16, #tpu.memory_space<vmem>>, %arg7: memref<1xf32, #tpu.memory_space<smem>>, %arg8: memref<1x1x256xf32, #tpu.memory_space<vmem>>) attributes {dimension_semantics = [#tpu.dimension_semantics<parallel>], iteration_bounds = array<i64: 2>, scalar_prefetch = 0 : i64, scratch_operands = 0 : i64, tpu.core_type = #tpu.core_type<tc>, window_params = [{transform_indices = @transform_0, window_bounds = array<i64: 256, 784>}, {pipeline_mode = #tpu.pipeline_mode<synchronous>, transform_indices = @transform_1, window_bounds = array<i64: 784, 256>}, {pipeline_mode = #tpu.pipeline_mode<synchronous>, transform_indices = @transform_2, window_bounds = array<i64: 1, 256>}, {pipeline_mode = #tpu.pipeline_mode<synchronous>, transform_indices = @transform_3, window_bounds = array<i64: 256, 256>}, {pipeline_mode = #tpu.pipeline_mode<synchronous>, transform_indices = @transform_4, window_bounds = array<i64: 1, 256>}, {pipeline_mode = #tpu.pipeline_mode<synchronous>, transform_indices = @transform_5, window_bounds = array<i64: 1, 256>}, {transform_indices = @transform_6, window_bounds = array<i64: 1>}, {transform_indices = @transform_7, window_bounds = array<i64: 1, 1, 256>}]} {
    %c0 = arith.constant 0 : index
    %c0_0 = arith.constant 0 : index
    %0 = vector.load %arg1[%c0, %c0_0] : memref<256x784xf32, #tpu.memory_space<vmem>>, vector<256x784xf32>
    %1 = arith.truncf %0 : vector<256x784xf32> to vector<256x784xbf16>
    %c0_1 = arith.constant 0 : index
    %c0_2 = arith.constant 0 : index
    %2 = vector.load %arg2[%c0_1, %c0_2] : memref<784x256xbf16, #tpu.memory_space<vmem>>, vector<784x256xbf16>
    %cst = arith.constant dense<0.000000e+00> : vector<256x256xf32>
    %3 = tpu.matmul %1, %2, %cst {dimension_numbers = #tpu.dot_dimension_numbers<[1], [0], [0], [1], [0, 0, 1, 1], [], []>} : vector<256x784xbf16>, vector<784x256xbf16>, vector<256x256xf32> -> vector<256x256xf32>
    %c0_3 = arith.constant 0 : index
    %c0_4 = arith.constant 0 : index
    %4 = vector.load %arg3[%c0_3, %c0_4] : memref<1x256xf32, #tpu.memory_space<vmem>>, vector<1x256xf32>
    %5 = vector.broadcast %4 : vector<1x256xf32> to vector<256x256xf32>
    %6 = arith.addf %3, %5 : vector<256x256xf32>
    %cst_5 = arith.constant 2.000000e-01 : f32
    %7 = vector.broadcast %cst_5 : f32 to vector<256x256xf32>
    %8 = arith.mulf %7, %6 : vector<256x256xf32>
    %9 = arith.maximumf %6, %8 : vector<256x256xf32>
    %10 = arith.truncf %9 : vector<256x256xf32> to vector<256x256xbf16>
    %c0_6 = arith.constant 0 : index
    %c0_7 = arith.constant 0 : index
    %11 = vector.load %arg4[%c0_6, %c0_7] : memref<256x256xbf16, #tpu.memory_space<vmem>>, vector<256x256xbf16>
    %cst_8 = arith.constant dense<0.000000e+00> : vector<256x256xf32>
    %12 = tpu.matmul %10, %11, %cst_8 {dimension_numbers = #tpu.dot_dimension_numbers<[1], [0], [0], [1], [0, 0, 1, 1], [], []>} : vector<256x256xbf16>, vector<256x256xbf16>, vector<256x256xf32> -> vector<256x256xf32>
    %c0_9 = arith.constant 0 : index
    %c0_10 = arith.constant 0 : index
    %13 = vector.load %arg5[%c0_9, %c0_10] : memref<1x256xf32, #tpu.memory_space<vmem>>, vector<1x256xf32>
    %14 = vector.broadcast %13 : vector<1x256xf32> to vector<256x256xf32>
    %15 = arith.addf %12, %14 : vector<256x256xf32>
    %cst_11 = arith.constant 2.000000e-01 : f32
    %16 = vector.broadcast %cst_11 : f32 to vector<256x256xf32>
    %17 = arith.mulf %16, %15 : vector<256x256xf32>
    %18 = arith.maximumf %15, %17 : vector<256x256xf32>
    %c0_12 = arith.constant 0 : index
    %c0_13 = arith.constant 0 : index
    %19 = vector.load %arg6[%c0_12, %c0_13] : memref<1x256xbf16, #tpu.memory_space<vmem>>, vector<1x256xbf16>
    %20 = arith.truncf %18 : vector<256x256xf32> to vector<256x256xbf16>
    %cst_14 = arith.constant dense<0.000000e+00> : vector<1x256xf32>
    %21 = tpu.matmul %19, %20, %cst_14 {dimension_numbers = #tpu.dot_dimension_numbers<[1], [1], [0], [0], [0, 0, 1, 0], [], []>} : vector<1x256xbf16>, vector<256x256xbf16>, vector<1x256xf32> -> vector<1x256xf32>
    %c0_15 = arith.constant 0 : index
    %22 = memref.load %arg7[%c0_15] : memref<1xf32, #tpu.memory_space<smem>>
    %23 = vector.broadcast %22 : f32 to vector<1x256xf32>
    %24 = arith.addf %21, %23 : vector<1x256xf32>
    %25 = arith.negf %24 : vector<1x256xf32>
    %26 = math.exp %25 : vector<1x256xf32>
    %cst_16 = arith.constant 1.000000e+00 : f32
    %27 = vector.broadcast %cst_16 : f32 to vector<1x256xf32>
    %28 = arith.addf %27, %26 : vector<1x256xf32>
    %29 = arith.divf %27, %28 : vector<1x256xf32>
    %c0_17 = arith.constant 0 : index
    %c0_18 = arith.constant 0 : index
    %c0_19 = arith.constant 0 : index
    %30 = vector.load %arg8[%c0_17, %c0_18, %c0_19] : memref<1x1x256xf32, #tpu.memory_space<vmem>>, vector<1x1x256xf32>
    %31 = vector.shape_cast %30 : vector<1x1x256xf32> to vector<1x256xf32>
    %32 = vector.shape_cast %29 : vector<1x256xf32> to vector<1x1x256xf32>
    tpu.vector_store %arg8[%c0_17, %c0_18, %c0_19], %32 {strides = array<i32>} : memref<1x1x256xf32, #tpu.memory_space<vmem>>, vector<1x1x256xf32>,
    return
  }
  func.func @transform_0(%arg0: i32) -> (i32, i32) {
    %c0_i32 = arith.constant 0 : i32
    %c0_i32_0 = arith.constant 0 : i32
    return %arg0, %c0_i32 : i32, i32
  }
  func.func @transform_1(%arg0: i32) -> (i32, i32) {
    %c0_i32 = arith.constant 0 : i32
    %c0_i32_0 = arith.constant 0 : i32
    %c0_i32_1 = arith.constant 0 : i32
    return %c0_i32, %c0_i32_0 : i32, i32
  }
  func.func @transform_2(%arg0: i32) -> (i32, i32) {
    %c0_i32 = arith.constant 0 : i32
    %c0_i32_0 = arith.constant 0 : i32
    %c0_i32_1 = arith.constant 0 : i32
    return %c0_i32, %c0_i32_0 : i32, i32
  }
  func.func @transform_3(%arg0: i32) -> (i32, i32) {
    %c0_i32 = arith.constant 0 : i32
    %c0_i32_0 = arith.constant 0 : i32
    %c0_i32_1 = arith.constant 0 : i32
    return %c0_i32, %c0_i32_0 : i32, i32
  }
  func.func @transform_4(%arg0: i32) -> (i32, i32) {
    %c0_i32 = arith.constant 0 : i32
    %c0_i32_0 = arith.constant 0 : i32
    %c0_i32_1 = arith.constant 0 : i32
    return %c0_i32, %c0_i32_0 : i32, i32
  }
  func.func @transform_5(%arg0: i32) -> (i32, i32) {
    %c0_i32 = arith.constant 0 : i32
    %c0_i32_0 = arith.constant 0 : i32
    %c0_i32_1 = arith.constant 0 : i32
    return %c0_i32, %c0_i32_0 : i32, i32
  }
  func.func @transform_6(%arg0: i32) -> i32 {
    %c0_i32 = arith.constant 0 : i32
    %c0_i32_0 = arith.constant 0 : i32
    return %c0_i32 : i32
  }
  func.func @transform_7(%arg0: i32) -> (i32, i32, i32) {
    %c0_i32 = arith.constant 0 : i32
    %c0_i32_0 = arith.constant 0 : i32
    %c0_i32_1 = arith.constant 0 : i32
    return %arg0, %c0_i32, %c0_i32_0 : i32, i32, i32
  }
}

</mosaic_0001>

<bundles_post_ra>
// kernel: discriminator_forward.1
= control target key start
LH: loop header
LB: loop body
LE: loop exit
PB: predicated region body
PF: predicated region fallthrough
CT: control target
= control target key end

     0   :  { %s4979_s0 = inlined_call_operand.vmem [shape: f32[512,784], index: 0, kind: input, shape index: {}]   ;;  %s4980_s1 = inlined_call_operand.vmem [shape: bf16[784,256], index: 1, kind: input, shape index: {}]   ;;  %s4981_s2 = inlined_call_operand.vmem [shape: f32[1,256], index: 2, kind: input, shape index: {}]   ;;  %s4982_s3 = inlined_call_operand.vmem [shape: bf16[256,256], index: 3, kind: input, shape index: {}]   ;;  %s4983_s4 = inlined_call_operand.vmem [shape: f32[1,256], index: 4, kind: input, shape index: {}]   ;;  %s4984_s5 = inlined_call_operand.vmem [shape: bf16[1,256], index: 5, kind: input, shape index: {}]   ;;  %s4985_s6 = inlined_call_operand.<no memory space> [shape: f32[1], index: 6, kind: input, shape index: {}]   ;;  %s4986_s7 = inlined_call_operand.hbm [shape: f32[2,1,256], index: 7, kind: output, shape index: {}]  }
   0x1   :  { %12 = sst [smem:[#allocation2]] %s4985_s6 }
   0x2   :  { %13 = vsyncpa [#allocation4], 0 }
   0x3   :  { %15 = vsyncpa [#allocation4 + $0x1], 0  ;;  %s3741_s26 = smov 0   ;;  %s3743_s27 = smov 0  }
   0x4   :  { %s3745_s28 = smov 0   ;;  %s3747_s29 = smov 0  }
   0x5 LB: > { %s2935_s6 = sadd.s32 4294967295, %s3693_s29   ;;  %s2936_s30 = sadd.s32 4294967294, %s3693_s29   ;;  %s3693_s29 = sphi %s3747_s29, %s5030_s29   ;;  %s3689_s28 = sphi %s3745_s28, %s5029_s28   ;;  %s3685_s27 = sphi %s3743_s27, %s5028_s27   ;;  %s3681_s26 = sphi %s3741_s26, %s5027_s26  }
   0x6   : > { %s3764_s8 = sadd.s32 1, %s3693_s29   ;;  %s180_s9 = sadd.s32 1, %s3689_s28 }
   0x7   : > { %s177_s10 = ssub.s32 %s3693_s29, %s3764_s8  ;;  %p190_p0 = scmp.ne.s32.totalorder %s3689_s28, %s3685_s27 }
   0x8   : > { %p178_p1 = scmp.eq.s32.totalorder %s177_s10, 0  ;;  %p191_p2 = scmp.eq.s32.totalorder %s2935_s6, 1 }
   0x9   : > { %p196_p3 = scmp.ne.s32.totalorder %s3685_s27, %s3681_s26  ;;  %p197_p4 = scmp.eq.s32.totalorder %s2936_s30, 1 }
   0xa   : > { %s3774_s11 = scalar_select %p178_p1, %s3689_s28, %s180_s9  }
   0xb   : > { %p3776_p5 = por %p191_p2, %p190_p0  ;;  %p3780_p6 = por %p197_p4, %p196_p3 }
   0xc   : > { %p2939_p7 = scmp.ge.s32.totalorder %s3693_s29, 1  ;;  %p243_p8 = scmp.lt.s32.totalorder %s3693_s29, 3 }
   0xe   : > { %p244_p9 = pnand %p2939_p7, %p243_p8 }
  0x10   : > { %247 = sbr.rel (%p244_p9) target bundleno = 1116 (0x45c), region = 48 }
  0x17   : > { %v3789_v0 = vld [vmem:[%s4980_s1 + $0x104] ss:$8 sps:$4 sm:$0xff]   ;;  %v3794_v1 = vld [vmem:[%s4980_s1 + $0x100] ss:$8 sps:$4 sm:$0xff]   ;;  %v3800_v2 = vld [vmem:[%s4980_s1 + $0x114] ss:$8 sps:$4 sm:$0xff]  }
  0x18   : > { %1462 = vmatprep.subr.bf16.mxu0 %v3789_v0  ;;  %v3806_v3 = vld [vmem:[%s4980_s1 + $0x110] ss:$8 sps:$4 sm:$0xff]   ;;  %v3812_v4 = vld [vmem:[%s4980_s1 + $0x124] ss:$8 sps:$4 sm:$0xff]   ;;  %s3814_s24 = sshll.u32 %s2935_s6, 5  ;;  %vm1220_vm0 = vcmask 130048  }
  0x19   : > { %1463 = vmatpush1.bf16.msra.mxu0 %v3794_v1  ;;  %v3820_v5 = vld [vmem:[%s4980_s1 + $0x120] ss:$8 sps:$4 sm:$0xff]   ;;  %v3826_v6 = vld [vmem:[%s4980_s1 + $0x134] ss:$8 sps:$4 sm:$0xff]   ;;  %p277_p10 = scmp.lt.s32.totalorder %s3814_s24, 63  ;;  %s2759_s15 = sld [smem:[#allocation2]] }
  0x1a   : > { %1464 = vmatprep.subr.bf16.mxu0 %v3800_v2  ;;  %v3833_v7 = vld [vmem:[%s4980_s1 + $0x130] ss:$8 sps:$4 sm:$0xff]   ;;  %v3839_v8 = vld [vmem:[%s4980_s1 + $0x144] ss:$8 sps:$4 sm:$0xff]   ;;  %v3846_v9 = vld [vmem:[%s4980_s1 + $0x140] ss:$8 sps:$4 sm:$0xff]  }
  0x1b   : > { %s278_s17 = scalar_select %p277_p10, %s3814_s24, 63  ;;  %v3852_v10 = vld [vmem:[%s4980_s1 + $0x154] ss:$8 sps:$4 sm:$0xff]   ;;  %v3858_v11 = vld [vmem:[%s4980_s1 + $0x150] ss:$8 sps:$4 sm:$0xff]  }
  0x1c   : > { %v3863_v12 = vld [vmem:[%s4980_s1 + $0x164] ss:$8 sps:$4 sm:$0xff]   ;;  %v3475_v14 = vld [vmem:[%s4980_s1] ss:$8 sps:$4 sm:$0xff]   ;;  %v3479_v16 = vld [vmem:[%s4980_s1 + $0x14] ss:$8 sps:$4 sm:$0xff]  }
  0x1d   : > { %1465 = vmatpush1.bf16.msra.mxu0 %v3806_v3  ;;  %s3386_s22 = smul.u32 56, %s278_s17  ;;  %v3473_v13 = vld [vmem:[%s4980_s1 + $0x4] ss:$8 sps:$4 sm:$0xff]   ;;  %v3880_v15 = vld [vmem:[%s4980_s1 + $0x160] ss:$8 sps:$4 sm:$0xff]   ;;  %s273_s17 = sand.u32 1, %s3685_s27  }
  0x1e   : > { %1466 = vmatprep.subr.bf16.mxu0 %v3812_v4  ;;  %1269 = vmatprep.subr.bf16.mxu1 %v3473_v13  ;;  %v3891_v18 = vld [vmem:[%s4980_s1 + $0x174] ss:$8 sps:$4 sm:$0xff]   ;;  %v3481_v20 = vld [vmem:[%s4980_s1 + $0x10] ss:$8 sps:$4 sm:$0xff]   ;;  %v3906_v23 = vld [vmem:[%s4980_s1 + $0x184] ss:$8 sps:$4 sm:$0xff]  }
  0x1f   : > { %s3872_s16 = scalar_lea.vmem %s4979_s0, %s3386_s22  ;;  %1270 = vmatpush1.bf16.msra.mxu1 %v3475_v14  ;;  %v3900_v22 = vld [vmem:[%s4980_s1 + $0x170] ss:$8 sps:$4 sm:$0xff]   ;;  %v3485_v24 = vld [vmem:[%s4980_s1 + $0x24] ss:$8 sps:$4 sm:$0xff]   ;;  %v3487_v25 = vld [vmem:[%s4980_s1 + $0x20] ss:$8 sps:$4 sm:$0xff]   ;;  %s4937_s22 = scalar_lea.hbm %s4986_s7, %s3814_s24 }
  0x20   : > { %v287_v17 = vld [vmem:[%s3872_s16 + $0x18] sm:$0xff]  ;;  %v294_v19 = vld [vmem:[%s3872_s16 + $0x50] sm:$0xff]  ;;  %1271 = vmatprep.subr.bf16.mxu1 %v3479_v16  ;;  %v3922_v27 = vld [vmem:[%s4980_s1 + $0x180] ss:$8 sps:$4 sm:$0xff]   ;;  %s2940_s18 = sshll.u32 %s273_s17, 1  ;;  %s2863_s25 = scalar_lea.sflag [#allocation4], %s273_s17 }
  0x21   : > { %1467 = vmatpush1.bf16.msra.mxu0 %v3820_v5  ;;  %v511_v21 = vpack.c.bf16 %v294_v19, %v287_v17  ;;  %v3491_v26 = vld [vmem:[%s4980_s1 + $0x34] ss:$8 sps:$4 sm:$0xff]   ;;  %v3493_v29 = vld [vmem:[%s4980_s1 + $0x30] ss:$8 sps:$4 sm:$0xff]   ;;  %v3497_v30 = vld [vmem:[%s4980_s1 + $0x44] ss:$8 sps:$4 sm:$0xff]  }
  0x22   : > { %1468 = vmatprep.subr.bf16.mxu0 %v3826_v6  ;;  %v3927_v28 = vld [vmem:[%s4980_s1 + $0x194] ss:$8 sps:$4 sm:$0xff]   ;;  %v3940_v31 = vld [vmem:[%s4980_s1 + $0x190] ss:$8 sps:$4 sm:$0xff]   ;;  %v3945_v32 = vld [vmem:[%s4980_s1 + $0x1a4] ss:$8 sps:$4 sm:$0xff]  }
  0x23   : > { %1494 = vmatprep.mubr.bf16.mxu0 %v511_v21  ;;  %1272 = vmatpush1.bf16.msra.mxu1 %v3481_v20  ;;  %v3499_v33 = vld [vmem:[%s4980_s1 + $0x40] ss:$8 sps:$4 sm:$0xff]   ;;  %v3503_v34 = vld [vmem:[%s4980_s1 + $0x54] ss:$8 sps:$4 sm:$0xff]   ;;  %v3505_v37 = vld [vmem:[%s4980_s1 + $0x50] ss:$8 sps:$4 sm:$0xff]  }
  0x24   : > { %1273 = vmatprep.subr.bf16.mxu1 %v3485_v24  ;;  %v3958_v35 = vld [vmem:[%s4980_s1 + $0x1a0] ss:$8 sps:$4 sm:$0xff]   ;;  %v3963_v36 = vld [vmem:[%s4980_s1 + $0x1b4] ss:$8 sps:$4 sm:$0xff]   ;;  %v3509_v38 = vld [vmem:[%s4980_s1 + $0x64] ss:$8 sps:$4 sm:$0xff]  }
  0x25   : > { %1469 = vmatpush1.bf16.msra.mxu0 %v3833_v7  ;;  %v3976_v39 = vld [vmem:[%s4980_s1 + $0x1b0] ss:$8 sps:$4 sm:$0xff]   ;;  %v3982_v40 = vld [vmem:[%s4980_s1 + $0x1c4] ss:$8 sps:$4 sm:$0xff]   ;;  %v3511_v41 = vld [vmem:[%s4980_s1 + $0x60] ss:$8 sps:$4 sm:$0xff]  }
  0x26   : > { %1470 = vmatprep.subr.bf16.mxu0 %v3839_v8  ;;  %v3515_v42 = vld [vmem:[%s4980_s1 + $0x74] ss:$8 sps:$4 sm:$0xff]   ;;  %v3994_v43 = vld [vmem:[%s4980_s1 + $0x1c0] ss:$8 sps:$4 sm:$0xff]   ;;  %v3517_v45 = vld [vmem:[%s4980_s1 + $0x70] ss:$8 sps:$4 sm:$0xff]  }
  0x27   : > { %1274 = vmatpush1.bf16.msra.mxu1 %v3487_v25  ;;  %v3999_v44 = vld [vmem:[%s4980_s1 + $0x1d4] ss:$8 sps:$4 sm:$0xff]   ;;  %v3521_v46 = vld [vmem:[%s4980_s1 + $0x84] ss:$8 sps:$4 sm:$0xff]   ;;  %v4012_v47 = vld [vmem:[%s4980_s1 + $0x1d0] ss:$8 sps:$4 sm:$0xff]  }
  0x28   : > { %1275 = vmatprep.subr.bf16.mxu1 %v3491_v26  ;;  %v4017_v48 = vld [vmem:[%s4980_s1 + $0x1e4] ss:$8 sps:$4 sm:$0xff]   ;;  %v3523_v49 = vld [vmem:[%s4980_s1 + $0x80] ss:$8 sps:$4 sm:$0xff]   ;;  %v3527_v50 = vld [vmem:[%s4980_s1 + $0x94] ss:$8 sps:$4 sm:$0xff]  }
  0x29   : > { %1471 = vmatpush1.bf16.msra.mxu0 %v3846_v9  ;;  %v4030_v51 = vld [vmem:[%s4980_s1 + $0x1e0] ss:$8 sps:$4 sm:$0xff]   ;;  %v4035_v52 = vld [vmem:[%s4980_s1 + $0x1f4] ss:$8 sps:$4 sm:$0xff]   ;;  %v3529_v53 = vld [vmem:[%s4980_s1 + $0x90] ss:$8 sps:$4 sm:$0xff]  }
  0x2a   : > { %1472 = vmatprep.subr.bf16.mxu0 %v3852_v10  ;;  %v4044_v54 = vld [vmem:[%s4980_s1 + $0x1f0] ss:$8 sps:$4 sm:$0xff]   ;;  %v3533_v56 = vld [vmem:[%s4980_s1 + $0xa4] ss:$8 sps:$4 sm:$0xff]   ;;  %v3535_v61 = vld [vmem:[%s4980_s1 + $0xa0] ss:$8 sps:$4 sm:$0xff]  }
  0x2b   : > { %1276 = vmatpush1.bf16.msra.mxu1 %v3493_v29  ;;  %v286_v55 = vld [vmem:[%s3872_s16 + $0x10] sm:$0xff]  ;;  %v293_v57 = vld [vmem:[%s3872_s16 + $0x48] sm:$0xff]  ;;  %v308_v60 = vld [vmem:[%s3872_s16 + $0xc0] sm:$0xff]  ;;  %s275_s19 = scalar_lea.vmem [#allocation3], %s2940_s18  ;;  %s3697_s30 = smov [#allocation3]  }
  0x2c   : > { %1277 = vmatprep.subr.bf16.mxu1 %v3497_v30  ;;  %v3484_v58 = vld [vmem:[%s4980_s1 + $0x204] ss:$8 sps:$4 sm:$0xff]   ;;  %v3539_v62 = vld [vmem:[%s4980_s1 + $0xb4] ss:$8 sps:$4 sm:$0xff]   ;;  %v510_v63 = vpack.c.bf16 %v293_v57, %v286_v55  ;;  %v3482_v13 = vld [vmem:[%s4980_s1 + $0x200] ss:$8 sps:$4 sm:$0xff]  }
  0x2d   : > { %1473 = vmatpush1.bf16.msra.mxu0 %v3858_v11  ;;  %v301_v59 = vld [vmem:[%s3872_s16 + $0x88] sm:$0xff]  ;;  %v3490_v16 = vld [vmem:[%s4980_s1 + $0x214] ss:$8 sps:$4 sm:$0xff]   ;;  %v3541_v17 = vld [vmem:[%s4980_s1 + $0xb0] ss:$8 sps:$4 sm:$0xff]   ;;  %s2877_s20 = sshll.u32 %s275_s19, 4  ;;  %s4939_s20 = int_to_ptr.vmem [resolvable:$true] %s2877_s20 }
  0x2e   : > { %1474 = vmatprep.subr.bf16.mxu0 %v3863_v12  ;;  %v518_v14 = vpack.c.bf16 %v308_v60, %v301_v59  ;;  %v3488_v19 = vld [vmem:[%s4980_s1 + $0x210] ss:$8 sps:$4 sm:$0xff]   ;;  %v300_v20 = vld [vmem:[%s3872_s16 + $0x80] sm:$0xff]  ;;  %s3635_s9 = sshll.u32 %s3697_s30, 4  ;;  %s3636_s9 = int_to_ptr.vmem [resolvable:$false] %s3635_s9 }
  0x2f   : > { %1278 = vmatpush1.bf16.msra.mxu1 %v3499_v33  ;;  %v3545_v21 = vld [vmem:[%s4980_s1 + $0xc4] ss:$8 sps:$4 sm:$0xff]   ;;  %v307_v24 = vld [vmem:[%s3872_s16 + $0xb8] sm:$0xff]  ;;  %v322_v29 = vld [vmem:[%s3872_s16 + $0x130] sm:$0xff]  ;;  %s3637_s10 = scalar_lea.vmem %s3636_s9, 64  ;;  %p3638_p0 = scmp.lt.s32.totalorder %s4939_s20, %s3636_s9 }
  0x30   : > { %1279 = vmatprep.subr.bf16.mxu1 %v3503_v34  ;;  %v3496_v25 = vld [vmem:[%s4980_s1 + $0x224] ss:$8 sps:$4 sm:$0xff]   ;;  %v315_v26 = vld [vmem:[%s3872_s16 + $0xf8] sm:$0xff]  ;;  %v3547_v30 = vld [vmem:[%s4980_s1 + $0xc0] ss:$8 sps:$4 sm:$0xff]   ;;  %v517_v34 = vpack.c.bf16 %v307_v24, %v300_v20 }
  0x31   : > { %1475 = vmatpush1.bf16.msra.mxu0 %v3880_v15  ;;  %v3551_v33 = vld [vmem:[%s4980_s1 + $0xd4] ss:$8 sps:$4 sm:$0xff]   ;;  %v3508_v57 = vld [vmem:[%s4980_s1 + $0x244] ss:$8 sps:$4 sm:$0xff]   ;;  %v3559_v60 = vld [vmem:[%s4980_s1 + $0xe0] ss:$8 sps:$4 sm:$0xff]  }
  0x32   : > { %1476 = vmatprep.subr.bf16.mxu0 %v3891_v18  ;;  %v336_v59 = vld [vmem:[%s3872_s16 + $0x1a0] sm:$0xff]  ;;  %v299_v20 = vld [vmem:[%s3872_s16 + $0x78] sm:$0xff] }
  0x33   : > { %1280 = vmatpush1.bf16.msra.mxu1 %v3505_v37  ;;  %v3494_v37 = vld [vmem:[%s4980_s1 + $0x220] ss:$8 sps:$4 sm:$0xff]   ;;  %v3512_v24 = vld [vmem:[%s4980_s1 + $0x250] ss:$8 sps:$4 sm:$0xff]  }
  0x34   : > { %1281 = vmatprep.subr.bf16.mxu1 %v3509_v38  ;;  %v3502_v38 = vld [vmem:[%s4980_s1 + $0x234] ss:$8 sps:$4 sm:$0xff]  }
  0x35   : > { %1477 = vmatpush1.bf16.msra.mxu0 %v3900_v22 }
  0x36   : > { %1478 = vmatprep.subr.bf16.mxu0 %v3906_v23 }
  0x37   : > { %1282 = vmatpush1.bf16.msra.mxu1 %v3511_v41  ;;  %v525_v41 = vpack.c.bf16 %v322_v29, %v315_v26  ;;  %v335_v26 = vld [vmem:[%s3872_s16 + $0x198] sm:$0xff] }
  0x38   : > { %1283 = vmatprep.subr.bf16.mxu1 %v3515_v42  ;;  %v3553_v42 = vld [vmem:[%s4980_s1 + $0xd0] ss:$8 sps:$4 sm:$0xff]  }
  0x39   : > { %1479 = vmatpush1.bf16.msra.mxu0 %v3922_v27 }
  0x3a   : > { %1480 = vmatprep.subr.bf16.mxu0 %v3927_v28 }
  0x3b   : > { %1284 = vmatpush1.bf16.msra.mxu1 %v3517_v45  ;;  %v3557_v45 = vld [vmem:[%s4980_s1 + $0xe4] ss:$8 sps:$4 sm:$0xff]  }
  0x3c   : > { %1285 = vmatprep.subr.bf16.mxu1 %v3521_v46  ;;  %v285_v46 = vld [vmem:[%s3872_s16 + $0x8] sm:$0xff] }
  0x3d   : > { %1481 = vmatpush1.bf16.msra.mxu0 %v3940_v31 }
  0x3e   : > { %1482 = vmatprep.subr.bf16.mxu0 %v3945_v32 }
  0x3f   : > { %1286 = vmatpush1.bf16.msra.mxu1 %v3523_v49  ;;  %v292_v49 = vld [vmem:[%s3872_s16 + $0x40] sm:$0xff] }
  0x40   : > { %1287 = vmatprep.subr.bf16.mxu1 %v3527_v50  ;;  %v3500_v50 = vld [vmem:[%s4980_s1 + $0x230] ss:$8 sps:$4 sm:$0xff]   ;;  %v509_v55 = vpack.c.bf16 %v292_v49, %v285_v46  ;;  %v313_v49 = vld [vmem:[%s3872_s16 + $0xe8] sm:$0xff] }
  0x41   : > { %1483 = vmatpush1.bf16.msra.mxu0 %v3958_v35  ;;  %v298_v46 = vld [vmem:[%s3872_s16 + $0x70] sm:$0xff] }
  0x42   : > { %1484 = vmatprep.subr.bf16.mxu0 %v3963_v36  ;;  %1301 = vmatprep.mubr.bf16.mxu1 %v509_v55  ;;  %v342_v55 = vld [vmem:[%s3872_s16 + $0x1d0] sm:$0xff] }
  0x43   : > { %1288 = vmatpush1.bf16.msra.mxu1 %v3529_v53  ;;  %v314_v53 = vld [vmem:[%s3872_s16 + $0xf0] sm:$0xff] }
  0x44   : > { %1289 = vmatprep.subr.bf16.mxu1 %v3533_v56  ;;  %v321_v56 = vld [vmem:[%s3872_s16 + $0x128] sm:$0xff] }
  0x45   : > { %1485 = vmatpush1.bf16.msra.mxu0 %v3976_v39 }
  0x46   : > { %1486 = vmatprep.subr.bf16.mxu0 %v3982_v40 }
  0x47   : > { %1290 = vmatpush1.bf16.msra.mxu1 %v3535_v61  ;;  %v3563_v61 = vld [vmem:[%s4980_s1 + $0xf4] ss:$8 sps:$4 sm:$0xff]  }
  0x48   : > { %1291 = vmatprep.subr.bf16.mxu1 %v3539_v62  ;;  %v524_v62 = vpack.c.bf16 %v321_v56, %v314_v53  ;;  %v3524_v53 = vld [vmem:[%s4980_s1 + $0x270] ss:$8 sps:$4 sm:$0xff]   ;;  %v349_v56 = vld [vmem:[%s3872_s16 + $0x208] sm:$0xff] }
  0x49   : > { %1487 = vmatpush1.bf16.msra.mxu0 %v3994_v43 }
  0x4a   : > { %1488 = vmatprep.subr.bf16.mxu0 %v3999_v44 }
  0x4b   : > { %1292 = vmatpush1.bf16.msra.mxu1 %v3541_v17  ;;  %v284_v17 = vld [vmem:[%s3872_s16] sm:$0xff] }
  0x4c   : > { %1293 = vmatprep.subr.bf16.mxu1 %v3545_v21  ;;  %v306_v21 = vld [vmem:[%s3872_s16 + $0xb0] sm:$0xff] }
  0x4d   : > { %1489 = vmatpush1.bf16.msra.mxu0 %v4012_v47 }
  0x4e   : > { %1490 = vmatprep.subr.bf16.mxu0 %v4017_v48 }
  0x4f   : > { %1294 = vmatpush1.bf16.msra.mxu1 %v3547_v30  ;;  %v3520_v30 = vld [vmem:[%s4980_s1 + $0x264] ss:$8 sps:$4 sm:$0xff]  }
  0x50   : > { %1295 = vmatprep.subr.bf16.mxu1 %v3551_v33  ;;  %v343_v33 = vld [vmem:[%s3872_s16 + $0x1d8] sm:$0xff] }
  0x51   : > { %1491 = vmatpush1.bf16.msra.mxu0 %v4030_v51 }
  0x52   : > { %1492 = vmatprep.subr.bf16.mxu0 %v4035_v52 }
  0x53   : > { %1296 = vmatpush1.bf16.msra.mxu1 %v3553_v42 }
  0x54   : > { %1297 = vmatprep.subr.bf16.mxu1 %v3557_v45  ;;  %v3526_v45 = vld [vmem:[%s4980_s1 + $0x274] ss:$8 sps:$4 sm:$0xff]  }
  0x55   : > { %1493 = vmatpush1.bf16.msra.mxu0 %v4044_v54 }
  0x56   : > { %1655 = vmatprep.subr.bf16.mxu0 %v3484_v58  ;;  %v329_v58 = vld [vmem:[%s3872_s16 + $0x168] sm:$0xff] }
  0x57   : > { %1298 = vmatpush1.bf16.msra.mxu1 %v3559_v60  ;;  %v538_v60 = vpack.c.bf16 %v349_v56, %v342_v55  ;;  %v347_v55 = vld [vmem:[%s3872_s16 + $0x1f8] sm:$0xff]  ;;  %v362_v56 = vld [vmem:[%s3872_s16 + $0x270] sm:$0xff] }
  0x58   : > { %1495 = vmatmul.mubr.bf16.vlgmr.msra.gmra.mrb[0].mxu0 %v510_v63  ;;  %v3506_v63 = vld [vmem:[%s4980_s1 + $0x240] ss:$8 sps:$4 sm:$0xff]   ;;  %1299 = vmatprep.subr.bf16.mxu1 %v3563_v61 }
  0x59   : > { %1656 = vmatpush1.bf16.msra.mxu0 %v3482_v13  ;;  %1504 = vmatprep.mubr.bf16.mxu0 %v518_v14  ;;  %v3514_v13 = vld [vmem:[%s4980_s1 + $0x254] ss:$8 sps:$4 sm:$0xff]   ;;  %v532_v14 = vpack.c.bf16 %v336_v59, %v329_v58  ;;  %v3532_v58 = vld [vmem:[%s4980_s1 + $0x284] ss:$8 sps:$4 sm:$0xff]   ;;  %v3530_v61 = vld [vmem:[%s4980_s1 + $0x280] ss:$8 sps:$4 sm:$0xff]  }
  0x5a   : > { %1657 = vmatprep.subr.bf16.mxu0 %v3490_v16  ;;  %v3565_v16 = vld [vmem:[%s4980_s1 + $0xf0] ss:$8 sps:$4 sm:$0xff]  }
  0x5b   : > { %1300 = vmatpush1.bf16.msra.mxu1 %v3565_v16  ;;  %v3536_v16 = vld [vmem:[%s4980_s1 + $0x290] ss:$8 sps:$4 sm:$0xff]  }
  0x5c   : > { %3098 = vmatprep.subr.bf16.mxu1 %v3789_v0  ;;  %v305_v0 = vld [vmem:[%s3872_s16 + $0xa8] sm:$0xff] }
  0x5d   : > { %1658 = vmatpush1.bf16.msra.mxu0 %v3488_v19  ;;  %v291_v19 = vld [vmem:[%s3872_s16 + $0x38] sm:$0xff] }
  0x5e   : > { %1659 = vmatprep.subr.bf16.mxu0 %v3496_v25  ;;  %v328_v25 = vld [vmem:[%s3872_s16 + $0x160] sm:$0xff]  ;;  %v508_v29 = vpack.c.bf16 %v291_v19, %v284_v17  ;;  %v363_v19 = vld [vmem:[%s3872_s16 + $0x278] sm:$0xff] }
  0x5f   : > { %v356_v17 = vld [vmem:[%s3872_s16 + $0x240] sm:$0xff] }
  0x60   : > { %1505 = vmatmul.mubr.bf16.gmra.mrb[4].mxu0 %v517_v34  ;;  %v350_v34 = vld [vmem:[%s3872_s16 + $0x210] sm:$0xff]  ;;  %1302 = vmatmul.mubr.bf16.vlgmr.msra.gmra.mrb[0].mxu1 %v508_v29 }
  0x61   : > { %1660 = vmatpush1.bf16.msra.mxu0 %v3494_v37  ;;  %1514 = vmatprep.mubr.bf16.mxu0 %v525_v41  ;;  %v516_v37 = vpack.c.bf16 %v306_v21, %v299_v20  ;;  %v3518_v41 = vld [vmem:[%s4980_s1 + $0x260] ss:$8 sps:$4 sm:$0xff]   ;;  %v539_v42 = vpack.c.bf16 %v350_v34, %v343_v33  ;;  %v3544_v21 = vld [vmem:[%s4980_s1 + $0x2a4] ss:$8 sps:$4 sm:$0xff]  }
  0x62   : > { %1661 = vmatprep.subr.bf16.mxu0 %v3502_v38  ;;  %v531_v38 = vpack.c.bf16 %v335_v26, %v328_v25  ;;  %3114 = vmatpush1.bf16.msra.mxu1 %v3794_v1  ;;  %v357_v1 = vld [vmem:[%s3872_s16 + $0x248] sm:$0xff]  ;;  %v545_v25 = vpack.c.bf16 %v363_v19, %v356_v17  ;;  %v348_v34 = vld [vmem:[%s3872_s16 + $0x200] sm:$0xff] }
  0x63   : > { %1311 = vmatprep.mubr.bf16.mxu1 %v516_v37  ;;  %3099 = vmatprep.subr.bf16.mxu1 %v3800_v2  ;;  %v364_v2 = vld [vmem:[%s3872_s16 + $0x280] sm:$0xff]  ;;  %v333_v33 = vld [vmem:[%s3872_s16 + $0x188] sm:$0xff]  ;;  %v3548_v37 = vld [vmem:[%s4980_s1 + $0x2b0] ss:$8 sps:$4 sm:$0xff]  }
  0x64   : > { %v3542_v26 = vld [vmem:[%s4980_s1 + $0x2a0] ss:$8 sps:$4 sm:$0xff]   ;;  %v3574_v19 = vld [vmem:[%s4980_s1 + $0x304] ss:$8 sps:$4 sm:$0xff]  }
  0x65   : > { %1662 = vmatpush1.bf16.msra.mxu0 %v3500_v50  ;;  %v320_v50 = vld [vmem:[%s3872_s16 + $0x120] sm:$0xff] }
  0x66   : > { %1663 = vmatprep.subr.bf16.mxu0 %v3508_v57  ;;  %v515_v57 = vpack.c.bf16 %v305_v0, %v298_v46  ;;  %v523_v59 = vpack.c.bf16 %v320_v50, %v313_v49  ;;  %3115 = vmatpush1.bf16.msra.mxu1 %v3806_v3  ;;  %v312_v3 = vld [vmem:[%s3872_s16 + $0xe0] sm:$0xff] }
  0x67   : > { %3100 = vmatprep.subr.bf16.mxu1 %v3812_v4  ;;  %v327_v4 = vld [vmem:[%s3872_s16 + $0x158] sm:$0xff]  ;;  %v3554_v49 = vld [vmem:[%s4980_s1 + $0x2c0] ss:$8 sps:$4 sm:$0xff]  }
  0x68   : > { %1515 = vmatmul.mubr.bf16.gmra.mrb[8].mxu0 %v524_v62  ;;  %v546_v62 = vpack.c.bf16 %v364_v2, %v357_v1  ;;  %1312 = vmatmul.mubr.bf16.gmra.mrb[4].mxu1 %v515_v57  ;;  %v3560_v57 = vld [vmem:[%s4980_s1 + $0x2d0] ss:$8 sps:$4 sm:$0xff]   ;;  %v376_v17 = vld [vmem:[%s3872_s16 + $0x2e0] sm:$0xff] }
  0x69   : > { %1664 = vmatpush1.bf16.msra.mxu0 %v3506_v63  ;;  %1524 = vmatprep.mubr.bf16.mxu0 %v532_v14  ;;  %v3538_v63 = vld [vmem:[%s4980_s1 + $0x294] ss:$8 sps:$4 sm:$0xff]  }
  0x6a   : > { %1665 = vmatprep.subr.bf16.mxu0 %v3514_v13  ;;  %1321 = vmatprep.mubr.bf16.mxu1 %v523_v59  ;;  %v319_v13 = vld [vmem:[%s3872_s16 + $0x118] sm:$0xff]  ;;  %v334_v14 = vld [vmem:[%s3872_s16 + $0x190] sm:$0xff]  ;;  %v3568_v59 = vld [vmem:[%s4980_s1 + $0x2e4] ss:$8 sps:$4 sm:$0xff]  }
  0x6b   : > { %3116 = vmatpush1.bf16.msra.mxu1 %v3820_v5  ;;  %v522_v20 = vpack.c.bf16 %v319_v13, %v312_v3  ;;  %v371_v5 = vld [vmem:[%s3872_s16 + $0x2b8] sm:$0xff]  ;;  %v354_v3 = vld [vmem:[%s3872_s16 + $0x230] sm:$0xff]  ;;  %v361_v13 = vld [vmem:[%s3872_s16 + $0x268] sm:$0xff] }
  0x6c   : > { %3101 = vmatprep.subr.bf16.mxu1 %v3826_v6  ;;  %v378_v6 = vld [vmem:[%s3872_s16 + $0x2f0] sm:$0xff]  ;;  %v391_v1 = vld [vmem:[%s3872_s16 + $0x358] sm:$0xff] }
  0x6d   : > { %1666 = vmatpush1.bf16.msra.mxu0 %v3512_v24  ;;  %v530_v24 = vpack.c.bf16 %v334_v14, %v327_v4  ;;  %v553_v29 = vpack.c.bf16 %v378_v6, %v371_v5  ;;  %v288_v14 = vld [vmem:[%s3872_s16 + $0x20] sm:$0xff]  ;;  %v543_v5 = vpack.c.bf16 %v361_v13, %v354_v3  ;;  %v431_v13 = vld [vmem:[%s3872_s16 + $0x498] sm:$0xff] }
  0x6e   : > { %1667 = vmatprep.subr.bf16.mxu0 %v3520_v30  ;;  %v3550_v30 = vld [vmem:[%s4980_s1 + $0x2b4] ss:$8 sps:$4 sm:$0xff]   ;;  %v424_v3 = vld [vmem:[%s3872_s16 + $0x460] sm:$0xff] }
  0x6f   : > { %3117 = vmatpush1.bf16.msra.mxu1 %v3833_v7  ;;  %v326_v7 = vld [vmem:[%s3872_s16 + $0x150] sm:$0xff] }
  0x70   : > { %1525 = vmatmul.mubr.bf16.gmra.mrb[12].mxu0 %v531_v38  ;;  %3102 = vmatprep.subr.bf16.mxu1 %v3839_v8  ;;  %v341_v8 = vld [vmem:[%s3872_s16 + $0x1c8] sm:$0xff]  ;;  %v370_v38 = vld [vmem:[%s3872_s16 + $0x2b0] sm:$0xff] }
  0x71   : > { %1668 = vmatpush1.bf16.msra.mxu0 %v3518_v41  ;;  %1534 = vmatprep.mubr.bf16.mxu0 %v539_v42  ;;  %v377_v41 = vld [vmem:[%s3872_s16 + $0x2e8] sm:$0xff]  ;;  %v529_v42 = vpack.c.bf16 %v333_v33, %v326_v7  ;;  %v537_v46 = vpack.c.bf16 %v348_v34, %v341_v8  ;;  %v302_v7 = vld [vmem:[%s3872_s16 + $0x90] sm:$0xff]  ;;  %v324_v33 = vld [vmem:[%s3872_s16 + $0x140] sm:$0xff] }
  0x72   : > { %1669 = vmatprep.subr.bf16.mxu0 %v3526_v45  ;;  %1322 = vmatmul.mubr.bf16.gmra.mrb[8].mxu1 %v522_v20  ;;  %v3556_v45 = vld [vmem:[%s4980_s1 + $0x2c4] ss:$8 sps:$4 sm:$0xff]   ;;  %v552_v0 = vpack.c.bf16 %v377_v41, %v370_v38  ;;  %v303_v20 = vld [vmem:[%s3872_s16 + $0x98] sm:$0xff] }
  0x73   : > { %1331 = vmatprep.mubr.bf16.mxu1 %v530_v24  ;;  %3118 = vmatpush1.bf16.msra.mxu1 %v3846_v9  ;;  %v385_v9 = vld [vmem:[%s3872_s16 + $0x328] sm:$0xff] }
  0x74   : > { %3103 = vmatprep.subr.bf16.mxu1 %v3852_v10  ;;  %v392_v10 = vld [vmem:[%s3872_s16 + $0x360] sm:$0xff]  ;;  %v389_v38 = vld [vmem:[%s3872_s16 + $0x348] sm:$0xff] }
  0x75   : > { %1670 = vmatpush1.bf16.msra.mxu0 %v3524_v53  ;;  %v560_v50 = vpack.c.bf16 %v392_v10, %v385_v9  ;;  %v3562_v53 = vld [vmem:[%s4980_s1 + $0x2d4] ss:$8 sps:$4 sm:$0xff]   ;;  %v397_v41 = vld [vmem:[%s3872_s16 + $0x388] sm:$0xff] }
  0x76   : > { %1671 = vmatprep.subr.bf16.mxu0 %v3532_v58  ;;  %v384_v58 = vld [vmem:[%s3872_s16 + $0x320] sm:$0xff]  ;;  %v331_v9 = vld [vmem:[%s3872_s16 + $0x178] sm:$0xff]  ;;  %v338_v10 = vld [vmem:[%s3872_s16 + $0x1b0] sm:$0xff] }
  0x77   : > { %3119 = vmatpush1.bf16.msra.mxu1 %v3858_v11  ;;  %v340_v11 = vld [vmem:[%s3872_s16 + $0x1c0] sm:$0xff] }
  0x78   : > { %1535 = vmatmul.mubr.bf16.gmra.mrb[16].mxu0 %v538_v60  ;;  %3104 = vmatprep.subr.bf16.mxu1 %v3863_v12  ;;  %v355_v12 = vld [vmem:[%s3872_s16 + $0x238] sm:$0xff]  ;;  %v536_v2 = vpack.c.bf16 %v347_v55, %v340_v11  ;;  %v296_v60 = vld [vmem:[%s3872_s16 + $0x60] sm:$0xff]  ;;  %v345_v55 = vld [vmem:[%s3872_s16 + $0x1e8] sm:$0xff] }
  0x79   : > { %1672 = vmatpush1.bf16.msra.mxu0 %v3530_v61  ;;  %1544 = vmatprep.mubr.bf16.mxu0 %v546_v62  ;;  %v3566_v61 = vld [vmem:[%s4980_s1 + $0x2e0] ss:$8 sps:$4 sm:$0xff]   ;;  %v559_v62 = vpack.c.bf16 %v391_v1, %v384_v58  ;;  %v410_v58 = vld [vmem:[%s3872_s16 + $0x3f0] sm:$0xff] }
  0x7a   : > { %1673 = vmatprep.subr.bf16.mxu0 %v3538_v63  ;;  %1332 = vmatmul.mubr.bf16.gmra.mrb[12].mxu1 %v529_v42  ;;  %v3571_v63 = vld [vmem:[%s4980_s1 + $0x2f4] ss:$8 sps:$4 sm:$0xff]   ;;  %v404_v42 = vld [vmem:[%s3872_s16 + $0x3c0] sm:$0xff]  ;;  %v425_v1 = vld [vmem:[%s3872_s16 + $0x468] sm:$0xff] }
  0x7b   : > { %1341 = vmatprep.mubr.bf16.mxu1 %v537_v46  ;;  %3120 = vmatpush1.bf16.msra.mxu1 %v3880_v15  ;;  %v289_v15 = vld [vmem:[%s3872_s16 + $0x28] sm:$0xff]  ;;  %v565_v46 = vpack.c.bf16 %v404_v42, %v397_v41 }
  0x7c   : > { %3105 = vmatprep.subr.bf16.mxu1 %v3891_v18  ;;  %v544_v18 = vpack.c.bf16 %v362_v56, %v355_v12  ;;  %v513_v4 = vpack.c.bf16 %v296_v60, %v289_v15  ;;  %v352_v12 = vld [vmem:[%s3872_s16 + $0x220] sm:$0xff]  ;;  %v351_v15 = vld [vmem:[%s3872_s16 + $0x218] sm:$0xff]  ;;  %v401_v42 = vld [vmem:[%s3872_s16 + $0x3a8] sm:$0xff] }
  0x7d   : > { %1674 = vmatpush1.bf16.msra.mxu0 %v3536_v16  ;;  %v369_v16 = vld [vmem:[%s3872_s16 + $0x2a8] sm:$0xff] }
  0x7e   : > { %1675 = vmatprep.subr.bf16.mxu0 %v3544_v21  ;;  %v310_v21 = vld [vmem:[%s3872_s16 + $0xd0] sm:$0xff]  ;;  %v551_v6 = vpack.c.bf16 %v376_v17, %v369_v16  ;;  %v365_v16 = vld [vmem:[%s3872_s16 + $0x288] sm:$0xff]  ;;  %v578_v17 = vpack.c.bf16 %v431_v13, %v424_v3  ;;  %v428_v3 = vld [vmem:[%s3872_s16 + $0x480] sm:$0xff] }
  0x7f   : > { %3121 = vmatpush1.bf16.msra.mxu1 %v3900_v22  ;;  %v3569_v22 = vld [vmem:[%s4980_s1 + $0x2f0] ss:$8 sps:$4 sm:$0xff]  }
  0x80   : > { %1545 = vmatmul.mubr.bf16.gmra.mrb[20].mxu0 %v545_v25  ;;  %3106 = vmatprep.subr.bf16.mxu1 %v3906_v23  ;;  %v295_v23 = vld [vmem:[%s3872_s16 + $0x58] sm:$0xff]  ;;  %v368_v25 = vld [vmem:[%s3872_s16 + $0x2a0] sm:$0xff] }
  0x81   : > { %1676 = vmatpush1.bf16.msra.mxu0 %v3542_v26  ;;  %1554 = vmatprep.mubr.bf16.mxu0 %v553_v29  ;;  %v512_v24 = vpack.c.bf16 %v295_v23, %v288_v14  ;;  %v520_v26 = vpack.c.bf16 %v310_v21, %v303_v20  ;;  %v383_v29 = vld [vmem:[%s3872_s16 + $0x318] sm:$0xff]  ;;  %v358_v14 = vld [vmem:[%s3872_s16 + $0x250] sm:$0xff]  ;;  %v373_v23 = vld [vmem:[%s3872_s16 + $0x2c8] sm:$0xff] }
  0x82   : > { %1677 = vmatprep.subr.bf16.mxu0 %v3550_v30  ;;  %1342 = vmatmul.mubr.bf16.gmra.mrb[16].mxu1 %v536_v2  ;;  %v390_v30 = vld [vmem:[%s3872_s16 + $0x350] sm:$0xff]  ;;  %v432_v2 = vld [vmem:[%s3872_s16 + $0x4a0] sm:$0xff]  ;;  %v547_v21 = vpack.c.bf16 %v365_v16, %v358_v14  ;;  %v435_v13 = vld [vmem:[%s3872_s16 + $0x4b8] sm:$0xff] }
  0x83   : > { %1351 = vmatprep.mubr.bf16.mxu1 %v544_v18  ;;  %3122 = vmatpush1.bf16.msra.mxu1 %v3922_v27  ;;  %v3572_v27 = vld [vmem:[%s4980_s1 + $0x300] ss:$8 sps:$4 sm:$0xff]   ;;  %v558_v34 = vpack.c.bf16 %v390_v30, %v383_v29  ;;  %v366_v18 = vld [vmem:[%s3872_s16 + $0x290] sm:$0xff]  ;;  %v387_v30 = vld [vmem:[%s3872_s16 + $0x338] sm:$0xff] }
  0x84   : > { %3107 = vmatprep.subr.bf16.mxu1 %v3927_v28  ;;  %v375_v28 = vld [vmem:[%s3872_s16 + $0x2d8] sm:$0xff]  ;;  %v450_v14 = vld [vmem:[%s3872_s16 + $0x530] sm:$0xff] }
  0x85   : > { %1678 = vmatpush1.bf16.msra.mxu0 %v3548_v37  ;;  %v550_v8 = vpack.c.bf16 %v375_v28, %v368_v25  ;;  %v460_v25 = vld [vmem:[%s3872_s16 + $0x580] sm:$0xff] }
  0x86   : > { %1679 = vmatprep.subr.bf16.mxu0 %v3556_v45  ;;  %v372_v28 = vld [vmem:[%s3872_s16 + $0x2c0] sm:$0xff] }
  0x87   : > { %3123 = vmatpush1.bf16.msra.mxu1 %v3940_v31  ;;  %v309_v31 = vld [vmem:[%s3872_s16 + $0xc8] sm:$0xff] }
  0x88   : > { %1555 = vmatmul.mubr.bf16.gmra.mrb[24].mxu0 %v552_v0  ;;  %3108 = vmatprep.subr.bf16.mxu1 %v3945_v32  ;;  %v317_v32 = vld [vmem:[%s3872_s16 + $0x108] sm:$0xff] }
  0x89   : > { %1680 = vmatpush1.bf16.msra.mxu0 %v3554_v49  ;;  %1564 = vmatprep.mubr.bf16.mxu0 %v560_v50  ;;  %v527_v37 = vpack.c.bf16 %v324_v33, %v317_v32  ;;  %v403_v49 = vld [vmem:[%s3872_s16 + $0x3b8] sm:$0xff] }
  0x8a   : > { %1681 = vmatprep.subr.bf16.mxu0 %v3562_v53  ;;  %1352 = vmatmul.mubr.bf16.gmra.mrb[20].mxu1 %v543_v5  ;;  %v411_v50 = vld [vmem:[%s3872_s16 + $0x3f8] sm:$0xff]  ;;  %v418_v53 = vld [vmem:[%s3872_s16 + $0x430] sm:$0xff] }
  0x8b   : > { %1361 = vmatprep.mubr.bf16.mxu1 %v551_v6  ;;  %3124 = vmatpush1.bf16.msra.mxu1 %v3958_v35  ;;  %v519_v35 = vpack.c.bf16 %v309_v31, %v302_v7  ;;  %v572_v56 = vpack.c.bf16 %v418_v53, %v411_v50  ;;  %v438_v6 = vld [vmem:[%s3872_s16 + $0x4d0] sm:$0xff]  ;;  %v415_v53 = vld [vmem:[%s3872_s16 + $0x418] sm:$0xff] }
  0x8c   : > { %3109 = vmatprep.subr.bf16.mxu1 %v3963_v36  ;;  %v382_v36 = vld [vmem:[%s3872_s16 + $0x310] sm:$0xff] }
  0x8d   : > { %1682 = vmatpush1.bf16.msra.mxu0 %v3560_v57  ;;  %v557_v45 = vpack.c.bf16 %v389_v38, %v382_v36  ;;  %v541_v57 = vpack.c.bf16 %v352_v12, %v345_v55  ;;  %v394_v7 = vld [vmem:[%s3872_s16 + $0x370] sm:$0xff]  ;;  %v393_v38 = vld [vmem:[%s3872_s16 + $0x368] sm:$0xff]  ;;  %v480_v12 = vld [vmem:[%s3872_s16 + $0x620] sm:$0xff] }
  0x8e   : > { %1683 = vmatprep.subr.bf16.mxu0 %v3568_v59  ;;  %v344_v59 = vld [vmem:[%s3872_s16 + $0x1e0] sm:$0xff]  ;;  %v562_v33 = vpack.c.bf16 %v394_v7, %v387_v30  ;;  %v386_v36 = vld [vmem:[%s3872_s16 + $0x330] sm:$0xff] }
  0x8f   : > { %3125 = vmatpush1.bf16.msra.mxu1 %v3976_v39  ;;  %v316_v39 = vld [vmem:[%s3872_s16 + $0x100] sm:$0xff] }
  0x90   : > { %1565 = vmatmul.mubr.bf16.gmra.mrb[28].mxu0 %v559_v62  ;;  %3110 = vmatprep.subr.bf16.mxu1 %v3982_v40  ;;  %v323_v40 = vld [vmem:[%s3872_s16 + $0x138] sm:$0xff]  ;;  %v540_v62 = vpack.c.bf16 %v351_v15, %v344_v59  ;;  %v436_v59 = vld [vmem:[%s3872_s16 + $0x4c0] sm:$0xff] }
  0x91   : > { %1684 = vmatpush1.bf16.msra.mxu0 %v3566_v61  ;;  %1687 = vmatprep.mubr.bf16.mxu0 %v513_v4  ;;  %v526_v0 = vpack.c.bf16 %v323_v40, %v316_v39  ;;  %v579_v61 = vpack.c.bf16 %v432_v2, %v425_v1  ;;  %v439_v4 = vld [vmem:[%s3872_s16 + $0x4d8] sm:$0xff]  ;;  %v408_v39 = vld [vmem:[%s3872_s16 + $0x3e0] sm:$0xff]  ;;  %v429_v2 = vld [vmem:[%s3872_s16 + $0x488] sm:$0xff] }
  0x92   : > { %1685 = vmatprep.subr.bf16.mxu0 %v3571_v63  ;;  %1362 = vmatmul.mubr.bf16.gmra.mrb[24].mxu1 %v550_v8  ;;  %v452_v8 = vld [vmem:[%s3872_s16 + $0x540] sm:$0xff] }
  0x93   : > { %1371 = vmatprep.mubr.bf16.mxu1 %v558_v34  ;;  %3126 = vmatpush1.bf16.msra.mxu1 %v3994_v43  ;;  %v534_v43 = vpack.c.bf16 %v338_v10, %v331_v9  ;;  %v459_v34 = vld [vmem:[%s3872_s16 + $0x578] sm:$0xff]  ;;  %v569_v9 = vpack.c.bf16 %v408_v39, %v401_v42  ;;  %v466_v10 = vld [vmem:[%s3872_s16 + $0x5b0] sm:$0xff]  ;;  %v412_v7 = vld [vmem:[%s3872_s16 + $0x400] sm:$0xff] }
  0x94   : > { %3111 = vmatprep.subr.bf16.mxu1 %v3999_v44  ;;  %v396_v44 = vld [vmem:[%s3872_s16 + $0x380] sm:$0xff]  ;;  %v592_v41 = vpack.c.bf16 %v459_v34, %v452_v8  ;;  %v463_v34 = vld [vmem:[%s3872_s16 + $0x598] sm:$0xff]  ;;  %v426_v39 = vld [vmem:[%s3872_s16 + $0x470] sm:$0xff] }
  0x95   : > { %1686 = vmatpush1.bf16.msra.mxu0 %v3569_v22  ;;  %v564_v11 = vpack.c.bf16 %v403_v49, %v396_v44  ;;  %v446_v22 = vld [vmem:[%s3872_s16 + $0x510] sm:$0xff]  ;;  %v400_v44 = vld [vmem:[%s3872_s16 + $0x3a0] sm:$0xff]  ;;  %v407_v49 = vld [vmem:[%s3872_s16 + $0x3d8] sm:$0xff] }
  0x96   : > { %1848 = vmatprep.subr.bf16.mxu0 %v3574_v19  ;;  %v380_v19 = vld [vmem:[%s3872_s16 + $0x300] sm:$0xff]  ;;  %v586_v20 = vpack.c.bf16 %v446_v22, %v439_v4  ;;  %v443_v22 = vld [vmem:[%s3872_s16 + $0x4f8] sm:$0xff] }
  0x97   : > { %3127 = vmatpush1.bf16.msra.mxu1 %v4012_v47  ;;  %v330_v47 = vld [vmem:[%s3872_s16 + $0x170] sm:$0xff]  ;;  %v555_v5 = vpack.c.bf16 %v380_v19, %v373_v23  ;;  %v590_v23 = vpack.c.bf16 %v450_v14, %v443_v22  ;;  %v456_v8 = vld [vmem:[%s3872_s16 + $0x560] sm:$0xff]  ;;  %v483_v22 = vld [vmem:[%s3872_s16 + $0x638] sm:$0xff] }
  0x98   : > { %1688 = vmatmul.mubr.bf16.vlgmr.msra.gmra.mrb[0].mxu0 %v512_v24  ;;  %3112 = vmatprep.subr.bf16.mxu1 %v4017_v48  ;;  %v337_v48 = vld [vmem:[%s3872_s16 + $0x1a8] sm:$0xff]  ;;  %v398_v19 = vld [vmem:[%s3872_s16 + $0x390] sm:$0xff] }
  0x99   : > { %1849 = vmatpush1.bf16.msra.mxu0 %v3572_v27  ;;  %1697 = vmatprep.mubr.bf16.mxu0 %v520_v26  ;;  %v445_v27 = vld [vmem:[%s3872_s16 + $0x508] sm:$0xff]  ;;  %v379_v26 = vld [vmem:[%s3872_s16 + $0x2f8] sm:$0xff]  ;;  %v490_v14 = vld [vmem:[%s3872_s16 + $0x670] sm:$0xff] }
  0x9a   : > { %1372 = vmatmul.mubr.bf16.gmra.mrb[28].mxu1 %v557_v45  ;;  %v453_v24 = vld [vmem:[%s3872_s16 + $0x548] sm:$0xff]  ;;  %v585_v29 = vpack.c.bf16 %v445_v27, %v438_v6  ;;  %v554_v32 = vpack.c.bf16 %v379_v26, %v372_v28  ;;  %v561_v45 = vpack.c.bf16 %v393_v38, %v386_v36  ;;  %v442_v6 = vld [vmem:[%s3872_s16 + $0x4f0] sm:$0xff]  ;;  %v464_v28 = vld [vmem:[%s3872_s16 + $0x5a0] sm:$0xff] }
  0x9b   : > { %1381 = vmatprep.mubr.bf16.mxu1 %v565_v46  ;;  %3128 = vmatpush1.bf16.msra.mxu1 %v4030_v51  ;;  %v533_v51 = vpack.c.bf16 %v337_v48, %v330_v47  ;;  %v593_v31 = vpack.c.bf16 %v460_v25, %v453_v24  ;;  %v473_v46 = vld [vmem:[%s3872_s16 + $0x5e8] sm:$0xff]  ;;  %v422_v47 = vld [vmem:[%s3872_s16 + $0x450] sm:$0xff] }
  0x9c   : > { %3113 = vmatprep.subr.bf16.mxu1 %v4035_v52  ;;  %v417_v52 = vld [vmem:[%s3872_s16 + $0x428] sm:$0xff]  ;;  %v599_v50 = vpack.c.bf16 %v473_v46, %v466_v10  ;;  %v576_v55 = vpack.c.bf16 %v422_v47, %v415_v53  ;;  %v478_v36 = vld [vmem:[%s3872_s16 + $0x610] sm:$0xff]  ;;  %v440_v47 = vld [vmem:[%s3872_s16 + $0x4e0] sm:$0xff] }
  0x9d   : > { %v571_v60 = vpack.c.bf16 %v417_v52, %v410_v58  ;;  %v414_v58 = vld [vmem:[%s3872_s16 + $0x410] sm:$0xff]  ;;  %v421_v52 = vld [vmem:[%s3872_s16 + $0x448] sm:$0xff] }
  0x9e   : > { %v449_v27 = vld [vmem:[%s3872_s16 + $0x528] sm:$0xff]  ;;  %v470_v10 = vld [vmem:[%s3872_s16 + $0x5d0] sm:$0xff] }
  0x9f   : > { %3129 = vmatpush1.bf16.msra.mxu1 %v4044_v54  ;;  %v359_v54 = vld [vmem:[%s3872_s16 + $0x258] sm:$0xff]  ;;  %v457_v25 = vld [vmem:[%s3872_s16 + $0x568] sm:$0xff] }
  0xa0   : > { %1698 = vmatmul.mubr.bf16.gmra.mrb[4].mxu0 %v519_v35  ;;  %v548_v63 = vpack.c.bf16 %v366_v18, %v359_v54  ;;  %v467_v35 = vld [vmem:[%s3872_s16 + $0x5b8] sm:$0xff]  ;;  %v583_v54 = vpack.c.bf16 %v436_v59, %v429_v2  ;;  %v494_v18 = vld [vmem:[%s3872_s16 + $0x690] sm:$0xff]  ;;  %v597_v30 = vpack.c.bf16 %v464_v28, %v457_v25  ;;  %v477_v46 = vld [vmem:[%s3872_s16 + $0x608] sm:$0xff] }
  0xa1   : > { %1707 = vmatprep.mubr.bf16.mxu0 %v527_v37  ;;  %v474_v37 = vld [vmem:[%s3872_s16 + $0x5f0] sm:$0xff]  ;;  %v3583_v25 = vld [vmem:[%s4982_s3 + $0x24] ss:$8 sps:$4 sm:$0xff]  }
  0xa2   : > { %1382 = vmatmul.mubr.bf16.gmra.mrb[32].mxu1 %v564_v11  ;;  %v600_v40 = vpack.c.bf16 %v474_v37, %v467_v35  ;;  %v568_v11 = vpack.c.bf16 %v407_v49, %v400_v44  ;;  %v471_v37 = vld [vmem:[%s3872_s16 + $0x5d8] sm:$0xff]  ;;  %v492_v44 = vld [vmem:[%s3872_s16 + $0x680] sm:$0xff]  ;;  %v454_v59 = vld [vmem:[%s3872_s16 + $0x550] sm:$0xff] }
  0xa3   : > { %1391 = vmatprep.mubr.bf16.mxu1 %v572_v56  ;;  %v487_v56 = vld [vmem:[%s3872_s16 + $0x658] sm:$0xff]  ;;  %v604_v42 = vpack.c.bf16 %v478_v36, %v471_v37  ;;  %v482_v28 = vld [vmem:[%s3872_s16 + $0x630] sm:$0xff]  ;;  %v3589_v36 = vld [vmem:[%s4982_s3 + $0x44] ss:$8 sps:$4 sm:$0xff]  }
  0xa4   : > { %v606_v1 = vpack.c.bf16 %v487_v56, %v480_v12  ;;  %v484_v12 = vld [vmem:[%s3872_s16 + $0x640] sm:$0xff]  ;;  %v491_v56 = vld [vmem:[%s3872_s16 + $0x678] sm:$0xff] }
  0xa8   : > { %1708 = vmatmul.mubr.bf16.gmra.mrb[8].mxu0 %v526_v0  ;;  %v481_v0 = vld [vmem:[%s3872_s16 + $0x628] sm:$0xff] }
  0xa9   : > { %1717 = vmatprep.mubr.bf16.mxu0 %v534_v43  ;;  %v488_v43 = vld [vmem:[%s3872_s16 + $0x660] sm:$0xff] }
  0xaa   : > { %1392 = vmatmul.mubr.bf16.gmra.mrb[36].mxu1 %v571_v60  ;;  %v607_v48 = vpack.c.bf16 %v488_v43, %v481_v0  ;;  %v575_v60 = vpack.c.bf16 %v421_v52, %v414_v58  ;;  %v485_v43 = vld [vmem:[%s3872_s16 + $0x648] sm:$0xff]  ;;  %v506_v58 = vld [vmem:[%s3872_s16 + $0x6f0] sm:$0xff] }
  0xab   : > { %1401 = vmatprep.mubr.bf16.mxu1 %v579_v61  ;;  %v501_v61 = vld [vmem:[%s3872_s16 + $0x6c8] sm:$0xff]  ;;  %v611_v53 = vpack.c.bf16 %v492_v44, %v485_v43  ;;  %v3598_v44 = vld [vmem:[%s4982_s3 + $0x74] ss:$8 sps:$4 sm:$0xff]  }
  0xac   : > { %v613_v4 = vpack.c.bf16 %v501_v61, %v494_v18  ;;  %v498_v18 = vld [vmem:[%s3872_s16 + $0x6b0] sm:$0xff]  ;;  %v505_v61 = vld [vmem:[%s3872_s16 + $0x6e8] sm:$0xff] }
  0xad   : > { %v3593_v43 = vld [vmem:[%s4982_s3 + $0x60] ss:$8 sps:$4 sm:$0xff]  }
  0xb0   : > { %1718 = vmatmul.mubr.bf16.gmra.mrb[12].mxu0 %v533_v51  ;;  %v495_v51 = vld [vmem:[%s3872_s16 + $0x698] sm:$0xff] }
  0xb1   : > { %1727 = vmatprep.mubr.bf16.mxu0 %v541_v57  ;;  %v502_v57 = vld [vmem:[%s3872_s16 + $0x6d0] sm:$0xff] }
  0xb2   : > { %1402 = vmatmul.mubr.bf16.gmra.mrb[40].mxu1 %v578_v17  ;;  %v614_v15 = vpack.c.bf16 %v502_v57, %v495_v51  ;;  %v582_v17 = vpack.c.bf16 %v435_v13, %v428_v3  ;;  %v499_v57 = vld [vmem:[%s3872_s16 + $0x6b8] sm:$0xff]  ;;  %v617_v3 = vpack.c.bf16 %v505_v61, %v498_v18  ;;  %v468_v13 = vld [vmem:[%s3872_s16 + $0x5c0] sm:$0xff]  ;;  %v374_v18 = vld [vmem:[%s3872_s16 + $0x2d0] sm:$0xff] }
  0xb3   : > { %1411 = vmatprep.mubr.bf16.mxu1 %v586_v20  ;;  %v405_v20 = vld [vmem:[%s3872_s16 + $0x3c8] sm:$0xff]  ;;  %v618_v2 = vpack.c.bf16 %v506_v58, %v499_v57 }
  0xb4   : > { %v566_v24 = vpack.c.bf16 %v405_v20, %v398_v19  ;;  %v290_v19 = vld [vmem:[%s3872_s16 + $0x30] sm:$0xff]  ;;  %v297_v20 = vld [vmem:[%s3872_s16 + $0x68] sm:$0xff] }
  0xb5   : > { %v3607_v58 = vld [vmem:[%s4982_s3 + $0xa4] ss:$8 sps:$4 sm:$0xff]  }
  0xb6   : > { %v381_v61 = vld [vmem:[%s3872_s16 + $0x308] sm:$0xff] }
  0xb8   : > { %1728 = vmatmul.mubr.bf16.gmra.mrb[16].mxu0 %v540_v62  ;;  %v399_v62 = vld [vmem:[%s3872_s16 + $0x398] sm:$0xff] }
  0xb9   : > { %1737 = vmatprep.mubr.bf16.mxu0 %v548_v63  ;;  %v406_v63 = vld [vmem:[%s3872_s16 + $0x3d0] sm:$0xff] }
  0xba   : > { %1412 = vmatmul.mubr.bf16.gmra.mrb[44].mxu1 %v585_v29  ;;  %v567_v16 = vpack.c.bf16 %v406_v63, %v399_v62  ;;  %v589_v29 = vpack.c.bf16 %v449_v27, %v442_v6  ;;  %v609_v6 = vpack.c.bf16 %v490_v14, %v483_v22  ;;  %v3578_v27 = vld [vmem:[%s4982_s3 + $0x10] ss:$8 sps:$4 sm:$0xff]   ;;  %v556_v22 = vpack.c.bf16 %v381_v61, %v374_v18 }
  0xbb   : > { %1421 = vmatprep.mubr.bf16.mxu1 %v593_v31  ;;  %v419_v31 = vld [vmem:[%s3872_s16 + $0x438] sm:$0xff]  ;;  %v486_v61 = vld [vmem:[%s3872_s16 + $0x650] sm:$0xff] }
  0xbc   : > { %v573_v35 = vpack.c.bf16 %v419_v31, %v412_v7  ;;  %v3581_v7 = vld [vmem:[%s4982_s3 + $0x20] ss:$8 sps:$4 sm:$0xff]   ;;  %v3586_v31 = vld [vmem:[%s4982_s3 + $0x34] ss:$8 sps:$4 sm:$0xff]  }
  0xc0   : > { %1738 = vmatmul.mubr.bf16.gmra.mrb[20].mxu0 %v547_v21  ;;  %v413_v21 = vld [vmem:[%s3872_s16 + $0x408] sm:$0xff] }
  0xc1   : > { %1747 = vmatprep.mubr.bf16.mxu0 %v555_v5  ;;  %v420_v5 = vld [vmem:[%s3872_s16 + $0x440] sm:$0xff] }
  0xc2   : > { %1422 = vmatmul.mubr.bf16.gmra.mrb[48].mxu1 %v592_v41  ;;  %v574_v26 = vpack.c.bf16 %v420_v5, %v413_v21  ;;  %v596_v41 = vpack.c.bf16 %v463_v34, %v456_v8  ;;  %v3580_v5 = vld [vmem:[%s4982_s3 + $0x14] ss:$8 sps:$4 sm:$0xff]  }
  0xc3   : > { %1431 = vmatprep.mubr.bf16.mxu1 %v600_v40  ;;  %v433_v40 = vld [vmem:[%s3872_s16 + $0x4a8] sm:$0xff] }
  0xc4   : > { %v580_v0 = vpack.c.bf16 %v433_v40, %v426_v39  ;;  %v3592_v39 = vld [vmem:[%s4982_s3 + $0x54] ss:$8 sps:$4 sm:$0xff]  }
  0xc5   : > { %v318_v40 = vld [vmem:[%s3872_s16 + $0x110] sm:$0xff] }
  0xc8   : > { %1748 = vmatmul.mubr.bf16.gmra.mrb[24].mxu0 %v554_v32  ;;  %v427_v32 = vld [vmem:[%s3872_s16 + $0x478] sm:$0xff] }
  0xc9   : > { %1757 = vmatprep.mubr.bf16.mxu0 %v562_v33  ;;  %v434_v33 = vld [vmem:[%s3872_s16 + $0x4b0] sm:$0xff] }
  0xca   : > { %1432 = vmatmul.mubr.bf16.gmra.mrb[52].mxu1 %v599_v50  ;;  %v581_v38 = vpack.c.bf16 %v434_v33, %v427_v32  ;;  %v603_v50 = vpack.c.bf16 %v477_v46, %v470_v10  ;;  %v304_v32 = vld [vmem:[%s3872_s16 + $0xa0] sm:$0xff]  ;;  %v311_v33 = vld [vmem:[%s3872_s16 + $0xd8] sm:$0xff] }
  0xcb   : > { %1441 = vmatprep.mubr.bf16.mxu1 %v607_v48  ;;  %v447_v48 = vld [vmem:[%s3872_s16 + $0x518] sm:$0xff]  ;;  %v521_v37 = vpack.c.bf16 %v311_v33, %v304_v32 }
  0xcc   : > { %v587_v51 = vpack.c.bf16 %v447_v48, %v440_v47  ;;  %v3590_v10 = vld [vmem:[%s4982_s3 + $0x50] ss:$8 sps:$4 sm:$0xff]   ;;  %v3601_v48 = vld [vmem:[%s4982_s3 + $0x84] ss:$8 sps:$4 sm:$0xff]  }
  0xd0   : > { %1758 = vmatmul.mubr.bf16.gmra.mrb[28].mxu0 %v561_v45  ;;  %v441_v45 = vld [vmem:[%s3872_s16 + $0x4e8] sm:$0xff] }
  0xd1   : > { %1767 = vmatprep.mubr.bf16.mxu0 %v569_v9  ;;  %v448_v9 = vld [vmem:[%s3872_s16 + $0x520] sm:$0xff] }
  0xd2   : > { %1442 = vmatmul.mubr.bf16.gmra.mrb[56].mxu1 %v606_v1  ;;  %v588_v49 = vpack.c.bf16 %v448_v9, %v441_v45  ;;  %v610_v1 = vpack.c.bf16 %v491_v56, %v484_v12  ;;  %v325_v45 = vld [vmem:[%s3872_s16 + $0x148] sm:$0xff]  ;;  %v346_v12 = vld [vmem:[%s3872_s16 + $0x1f0] sm:$0xff] }
  0xd3   : > { %1451 = vmatprep.mubr.bf16.mxu1 %v614_v15  ;;  %v461_v15 = vld [vmem:[%s3872_s16 + $0x588] sm:$0xff]  ;;  %v528_v46 = vpack.c.bf16 %v325_v45, %v318_v40  ;;  %v444_v45 = vld [vmem:[%s3872_s16 + $0x500] sm:$0xff] }
  0xd4   : > { %v594_v62 = vpack.c.bf16 %v461_v15, %v454_v59  ;;  %v353_v56 = vld [vmem:[%s3872_s16 + $0x228] sm:$0xff]  ;;  %v367_v59 = vld [vmem:[%s3872_s16 + $0x298] sm:$0xff] }
  0xd5   : > { %v542_v57 = vpack.c.bf16 %v353_v56, %v346_v12  ;;  %v3608_v15 = vld [vmem:[%s4982_s3 + $0xb0] ss:$8 sps:$4 sm:$0xff]   ;;  %v3622_v56 = vld [vmem:[%s4982_s3 + $0xf4] ss:$8 sps:$4 sm:$0xff]  }
  0xd8   : > { %1768 = vmatmul.mubr.bf16.gmra.mrb[32].mxu0 %v568_v11  ;;  %v455_v11 = vld [vmem:[%s3872_s16 + $0x558] sm:$0xff] }
  0xd9   : > { %1777 = vmatprep.mubr.bf16.mxu0 %v576_v55  ;;  %v462_v55 = vld [vmem:[%s3872_s16 + $0x590] sm:$0xff] }
  0xda   : > { %1452 = vmatmul.mubr.bf16.gmra.mrb[60].mxu1 %v613_v4  ;;  %v595_v52 = vpack.c.bf16 %v462_v55, %v455_v11  ;;  %v475_v4 = vld [vmem:[%s3872_s16 + $0x5f8] sm:$0xff]  ;;  %v3599_v11 = vld [vmem:[%s4982_s3 + $0x80] ss:$8 sps:$4 sm:$0xff]  }
  0xdb   : > { %1574 = vmatprep.mubr.bf16.mxu1 %v567_v16  ;;  %v3575_v16 = vld [vmem:[%s4982_s3] ss:$8 sps:$4 sm:$0xff]   ;;  %v601_v21 = vpack.c.bf16 %v475_v4, %v468_v13  ;;  %v3604_v55 = vld [vmem:[%s4982_s3 + $0x94] ss:$8 sps:$4 sm:$0xff]   ;;  %v3613_v4 = vld [vmem:[%s4982_s3 + $0xc4] ss:$8 sps:$4 sm:$0xff]  }
  0xdc   : > { %v3611_v13 = vld [vmem:[%s4982_s3 + $0xc0] ss:$8 sps:$4 sm:$0xff]  }
  0xe0   : > { %1778 = vmatmul.mubr.bf16.gmra.mrb[36].mxu0 %v575_v60  ;;  %v469_v60 = vld [vmem:[%s3872_s16 + $0x5c8] sm:$0xff] }
  0xe1   : > { %1787 = vmatprep.mubr.bf16.mxu0 %v583_v54  ;;  %v476_v54 = vld [vmem:[%s3872_s16 + $0x600] sm:$0xff] }
  0xe2   : > { %1575 = vmatmul.mubr.bf16.vlgmr.msra.gmra.mrb[32].mxu1 %v566_v24  ;;  %v602_v63 = vpack.c.bf16 %v476_v54, %v469_v60  ;;  %v514_v24 = vpack.c.bf16 %v297_v20, %v290_v19 }
  0xe3   : > { %1584 = vmatprep.mubr.bf16.mxu1 %v574_v26  ;;  %v489_v26 = vld [vmem:[%s3872_s16 + $0x668] sm:$0xff] }
  0xe4   : > { %v608_v8 = vpack.c.bf16 %v489_v26, %v482_v28 }
  0xe8   : > { %1788 = vmatmul.mubr.bf16.gmra.mrb[40].mxu0 %v582_v17  ;;  %v3577_v17 = vld [vmem:[%s4982_s3 + $0x4] ss:$8 sps:$4 sm:$0xff]  }
  0xe9   : > { %1797 = vmatprep.mubr.bf16.mxu0 %v590_v23  ;;  %v3695_v23 = vmov 0   ;;  %2405 = vmatprep.subr.bf16.mxu1 %v3577_v17  ;;  %v395_v17 = vld [vmem:[%s3872_s16 + $0x378] sm:$0xff] }
  0xea   : > { %1585 = vmatmul.mubr.bf16.gmra.mrb[36].mxu1 %v573_v35  ;;  %v3584_v35 = vld [vmem:[%s4982_s3 + $0x30] ss:$8 sps:$4 sm:$0xff]  }
  0xeb   : > { %1594 = vmatprep.mubr.bf16.mxu1 %v581_v38  ;;  %2406 = vmatpush1.bf16.msra.mxu1 %v3575_v16  ;;  %v496_v38 = vld [vmem:[%s3872_s16 + $0x6a0] sm:$0xff] }
  0xec   : > { %2407 = vmatprep.subr.bf16.mxu1 %v3580_v5  ;;  %v388_v16 = vld [vmem:[%s3872_s16 + $0x340] sm:$0xff] }
  0xed   : > { %v563_v5 = vpack.c.bf16 %v395_v17, %v388_v16  ;;  %v507_v16 = vld [vmem:[%s3872_s16 + $0x6f8] sm:$0xff] }
  0xef   : > { %2408 = vmatpush1.bf16.msra.mxu1 %v3578_v27  ;;  %v402_v27 = vld [vmem:[%s3872_s16 + $0x3b0] sm:$0xff] }
  0xf0   : > { %1798 = vmatmul.mubr.bf16.gmra.mrb[44].mxu0 %v589_v29  ;;  %v497_v29 = vld [vmem:[%s3872_s16 + $0x6a8] sm:$0xff]  ;;  %2409 = vmatprep.subr.bf16.mxu1 %v3583_v25 }
  0xf1   : > { %1807 = vmatprep.mubr.bf16.mxu0 %v597_v30  ;;  %v504_v30 = vld [vmem:[%s3872_s16 + $0x6e0] sm:$0xff] }
  0xf2   : > { %1595 = vmatmul.mubr.bf16.gmra.mrb[40].mxu1 %v580_v0  ;;  %v616_v34 = vpack.c.bf16 %v504_v30, %v497_v29  ;;  %v3595_v0 = vld [vmem:[%s4982_s3 + $0x64] ss:$8 sps:$4 sm:$0xff]  }
  0xf3   : > { %1604 = vmatprep.mubr.bf16.mxu1 %v588_v49  ;;  %2410 = vmatpush1.bf16.msra.mxu1 %v3581_v7  ;;  %v332_v49 = vld [vmem:[%s3872_s16 + $0x180] sm:$0xff] }
  0xf4   : > { %2411 = vmatprep.subr.bf16.mxu1 %v3586_v31  ;;  %v416_v7 = vld [vmem:[%s3872_s16 + $0x420] sm:$0xff]  ;;  %v423_v31 = vld [vmem:[%s3872_s16 + $0x458] sm:$0xff] }
  0xf7   : > { %2412 = vmatpush1.bf16.msra.mxu1 %v3584_v35 }
  0xf8   : > { %1808 = vmatmul.mubr.bf16.gmra.mrb[48].mxu0 %v596_v41  ;;  %v503_v41 = vld [vmem:[%s3872_s16 + $0x6d8] sm:$0xff]  ;;  %2413 = vmatprep.subr.bf16.mxu1 %v3589_v36  ;;  %v437_v36 = vld [vmem:[%s3872_s16 + $0x4c8] sm:$0xff] }
  0xf9   : > { %1817 = vmatprep.mubr.bf16.mxu0 %v604_v42  ;;  %v3587_v42 = vld [vmem:[%s4982_s3 + $0x40] ss:$8 sps:$4 sm:$0xff]   ;;  %v615_v9 = vpack.c.bf16 %v503_v41, %v496_v38 }
  0xfa   : > { %1605 = vmatmul.mubr.bf16.gmra.mrb[44].mxu1 %v587_v51  ;;  %v3602_v51 = vld [vmem:[%s4982_s3 + $0x90] ss:$8 sps:$4 sm:$0xff]  }
  0xfb   : > { %1614 = vmatprep.mubr.bf16.mxu1 %v595_v52  ;;  %2414 = vmatpush1.bf16.msra.mxu1 %v3587_v42  ;;  %v3605_v52 = vld [vmem:[%s4982_s3 + $0xa0] ss:$8 sps:$4 sm:$0xff]  }
  0xfc   : > { %2415 = vmatprep.subr.bf16.mxu1 %v3592_v39 }
  0xff   : > { %2416 = vmatpush1.bf16.msra.mxu1 %v3590_v10 }
 0x100   : > { %1818 = vmatmul.mubr.bf16.gmra.mrb[52].mxu0 %v603_v50  ;;  %2417 = vmatprep.subr.bf16.mxu1 %v3595_v0  ;;  %v339_v50 = vld [vmem:[%s3872_s16 + $0x1b8] sm:$0xff] }
 0x101   : > { %1827 = vmatprep.mubr.bf16.mxu0 %v611_v53  ;;  %v3596_v53 = vld [vmem:[%s4982_s3 + $0x70] ss:$8 sps:$4 sm:$0xff]   ;;  %v535_v47 = vpack.c.bf16 %v339_v50, %v332_v49  ;;  %v3616_v0 = vld [vmem:[%s4982_s3 + $0xd4] ss:$8 sps:$4 sm:$0xff]   ;;  %v3619_v50 = vld [vmem:[%s4982_s3 + $0xe4] ss:$8 sps:$4 sm:$0xff]  }
 0x102   : > { %1615 = vmatmul.mubr.bf16.gmra.mrb[48].mxu1 %v594_v62 }
 0x103   : > { %1624 = vmatprep.mubr.bf16.mxu1 %v602_v63  ;;  %2418 = vmatpush1.bf16.msra.mxu1 %v3593_v43 }
 0x104   : > { %2419 = vmatprep.subr.bf16.mxu1 %v3598_v44  ;;  %v3614_v44 = vld [vmem:[%s4982_s3 + $0xd0] ss:$8 sps:$4 sm:$0xff]  }
 0x107   : > { %2420 = vmatpush1.bf16.msra.mxu1 %v3596_v53  ;;  %v3617_v53 = vld [vmem:[%s4982_s3 + $0xe0] ss:$8 sps:$4 sm:$0xff]  }
 0x108   : > { %1828 = vmatmul.mubr.bf16.gmra.mrb[56].mxu0 %v610_v1  ;;  %2421 = vmatprep.subr.bf16.mxu1 %v3601_v48  ;;  %v3610_v1 = vld [vmem:[%s4982_s3 + $0xb4] ss:$8 sps:$4 sm:$0xff]  }
 0x109   : > { %1837 = vmatprep.mubr.bf16.mxu0 %v618_v2  ;;  %v360_v2 = vld [vmem:[%s3872_s16 + $0x260] sm:$0xff]  ;;  %v458_v48 = vld [vmem:[%s3872_s16 + $0x570] sm:$0xff] }
 0x10a   : > { %1625 = vmatmul.mubr.bf16.gmra.mrb[52].mxu1 %v601_v21  ;;  %v549_v60 = vpack.c.bf16 %v367_v59, %v360_v2  ;;  %v479_v2 = vld [vmem:[%s3872_s16 + $0x618] sm:$0xff] }
 0x10b   : > { %1634 = vmatprep.mubr.bf16.mxu1 %v609_v6  ;;  %2422 = vmatpush1.bf16.msra.mxu1 %v3599_v11  ;;  %v465_v11 = vld [vmem:[%s3872_s16 + $0x5a8] sm:$0xff] }
 0x10c   : > { %2423 = vmatprep.subr.bf16.mxu1 %v3604_v55 }
 0x10f   : > { %2424 = vmatpush1.bf16.msra.mxu1 %v3602_v51 }
 0x110   : > { %1838 = vmatmul.mubr.bf16.gmra.mrb[60].mxu0 %v617_v3  ;;  %2425 = vmatprep.subr.bf16.mxu1 %v3607_v58  ;;  %v598_v58 = vpack.c.bf16 %v465_v11, %v458_v48 }
 0x111   : > { %1880 = vmatprep.mubr.bf16.mxu0 %v3695_v23 }
 0x112   : > { %1635 = vmatmul.mubr.bf16.gmra.mrb[56].mxu1 %v608_v8 }
 0x113   : > { %1644 = vmatprep.mubr.bf16.mxu1 %v616_v34  ;;  %2426 = vmatpush1.bf16.msra.mxu1 %v3605_v52  ;;  %v577_v34 = vpack.c.bf16 %v423_v31, %v416_v7 }
 0x114   : > { %2427 = vmatprep.subr.bf16.mxu1 %v3610_v1  ;;  %v472_v1 = vld [vmem:[%s3872_s16 + $0x5e0] sm:$0xff] }
 0x115   : > { %v605_v18 = vpack.c.bf16 %v479_v2, %v472_v1 }
 0x117   : > { %2428 = vmatpush1.bf16.msra.mxu1 %v3608_v15 }
 0x118   : > { %3041 = vmatmul.mubr.msk.bf16.vlgmr.msra.gmra.mrb[0].mxu0 %vm1220_vm0, %v514_v24  ;;  %2429 = vmatprep.subr.bf16.mxu1 %v3613_v4  ;;  %v409_v24 = vld [vmem:[%s3872_s16 + $0x3e8] sm:$0xff] }
 0x119   : > { %1890 = vmatprep.mubr.bf16.mxu0 %v3695_v23  ;;  %v570_v29 = vpack.c.bf16 %v409_v24, %v402_v27 }
 0x11a   : > { %1645 = vmatmul.mubr.bf16.gmra.mrb[60].mxu1 %v615_v9  ;;  %v451_v9 = vld [vmem:[%s3872_s16 + $0x538] sm:$0xff] }
 0x11b   : > { %2430 = vmatpush1.bf16.msra.mxu1 %v3611_v13  ;;  %v591_v49 = vpack.c.bf16 %v451_v9, %v444_v45  ;;  %v493_v13 = vld [vmem:[%s3872_s16 + $0x688] sm:$0xff] }
 0x11c   : > { %2431 = vmatprep.subr.bf16.mxu1 %v3616_v0  ;;  %v612_v4 = vpack.c.bf16 %v493_v13, %v486_v61 }
 0x11f   : > { %2432 = vmatpush1.bf16.msra.mxu1 %v3614_v44  ;;  %v4987_v44 = vlaneseq }
 0x120   : > { %3042 = vmatmul.mubr.msk.bf16.gmra.mrb[4].mxu0 %vm1220_vm0, %v521_v37  ;;  %v430_v37 = vld [vmem:[%s3872_s16 + $0x490] sm:$0xff]  ;;  %2433 = vmatprep.subr.bf16.mxu1 %v3619_v50 }
 0x121   : > { %1900 = vmatprep.mubr.bf16.mxu0 %v3695_v23  ;;  %v584_v39 = vpack.c.bf16 %v437_v36, %v430_v37 }
 0x123   : > { %2434 = vmatpush1.bf16.msra.mxu1 %v3617_v53  ;;  %v4666_v53 = vshrl.u32 %v4987_v44, 7 }
 0x124   : > { %2435 = vmatprep.subr.bf16.mxu1 %v3622_v56 }
 0x125   : > { %4997 = vst [vmem:[#allocation9_spill] sm:$0xff] %v4666_v53  ;;  %v4988_v56 = vsub.s32 0, %v4666_v53  ;;  %v4989_v1 = vsub.s32 1, %v4666_v53 }
 0x128   : > { %3043 = vmatmul.mubr.msk.bf16.gmra.mrb[8].mxu0 %vm1220_vm0, %v528_v46 }
 0x129   : > { %1910 = vmatprep.mubr.bf16.mxu0 %v3695_v23 }
 0x130   : > { %3044 = vmatmul.mubr.msk.bf16.gmra.mrb[12].mxu0 %vm1220_vm0, %v535_v47 }
 0x131   : > { %1920 = vmatprep.mubr.bf16.mxu0 %v3695_v23 }
 0x133   : > { %v4505_v54 = vpop.f32.mrb[0].mxu1 }
 0x134   : > { %v4510_v62 = vpop.f32.mrb[1].mxu1 }
 0x135   : > { %v4512_v63 = vpop.f32.mrb[2].mxu1 }
 0x136   : > { %v4514_v3 = vpop.f32.mrb[3].mxu1 }
 0x138   : > { %3045 = vmatmul.mubr.msk.bf16.gmra.mrb[16].mxu0 %vm1220_vm0, %v542_v57  ;;  %v3620_v57 = vld [vmem:[%s4982_s3 + $0xf0] ss:$8 sps:$4 sm:$0xff]  }
 0x139   : > { %1930 = vmatprep.mubr.bf16.mxu0 %v3695_v23  ;;  %2436 = vmatpush1.bf16.msra.mxu1 %v3620_v57 }
 0x13b   : > { %v4523_v14 = vpop.f32.mrb[4].mxu1 }
 0x13c   : > { %v4528_v19 = vpop.f32.mrb[5].mxu1 }
 0x13d   : > { %v4530_v20 = vpop.f32.mrb[6].mxu1 }
 0x13e   : > { %v4532_v21 = vpop.f32.mrb[7].mxu1 }
 0x140   : > { %3046 = vmatmul.mubr.msk.bf16.gmra.mrb[20].mxu0 %vm1220_vm0, %v549_v60 }
 0x141   : > { %1940 = vmatprep.mubr.bf16.mxu0 %v3695_v23 }
 0x145   : > { %v4535_v6 = vpop.f32.mrb[8].mxu1 }
 0x146   : > { %v4540_v25 = vpop.f32.mrb[9].mxu1 }
 0x147   : > { %v4542_v28 = vpop.f32.mrb[10].mxu1 }
 0x148   : > { %3047 = vmatmul.mubr.msk.bf16.gmra.mrb[24].mxu0 %vm1220_vm0, %v556_v22  ;;  %v4544_v26 = vpop.f32.mrb[11].mxu1  ;;  %v500_v22 = vld [vmem:[%s3872_s16 + $0x6c0] sm:$0xff]  ;;  %s3631_s16 = scalar_lea.vmem %s4939_s20, 32 }
 0x149   : > { %1950 = vmatprep.mubr.bf16.mxu0 %v3695_v23  ;;  %v619_v17 = vpack.c.bf16 %v507_v16, %v500_v22  ;;  %p3632_p11 = scmp.ne.s32.totalorder %s4939_s20, %s3631_s16  ;;  %p3639_p1 = scmp.lt.s32.totalorder %s3637_s10, %s3631_s16 }
 0x14b   : > { %p3633_p12 = pnand %p3632_p11, %p3776_p5  ;;  %p3640_p2 = por %p3639_p1, %p3638_p0 }
 0x14d   : > { %v4547_v30 = vpop.f32.mrb[12].mxu1  ;;  %p3634_p13 = pneg %p3633_p12 }
 0x14e   : > { %v4552_v32 = vpop.f32.mrb[13].mxu1 }
 0x14f   : > { %v4554_v33 = vpop.f32.mrb[14].mxu1  ;;  %p3641_p3 = pnand %p3640_p2, %p3634_p13 }
 0x150   : > { %3048 = vmatmul.mubr.msk.bf16.gmra.mrb[28].mxu0 %vm1220_vm0, %v563_v5  ;;  %v4556_v8 = vpop.f32.mrb[15].mxu1 }
 0x151   : > { %1960 = vmatprep.mubr.bf16.mxu0 %v3695_v23 }
 0x155   : > { %v4559_v35 = vpop.f32.mrb[16].mxu1 }
 0x156   : > { %v4564_v38 = vpop.f32.mrb[17].mxu1 }
 0x157   : > { %v4566_v41 = vpop.f32.mrb[18].mxu1 }
 0x158   : > { %3049 = vmatmul.mubr.msk.bf16.gmra.mrb[32].mxu0 %vm1220_vm0, %v570_v29  ;;  %v4568_v42 = vpop.f32.mrb[19].mxu1 }
 0x159   : > { %1970 = vmatprep.mubr.bf16.mxu0 %v3695_v23 }
 0x15d   : > { %v4571_v40 = vpop.f32.mrb[20].mxu1 }
 0x15e   : > { %v4576_v10 = vpop.f32.mrb[21].mxu1 }
 0x15f   : > { %v4578_v46 = vpop.f32.mrb[22].mxu1 }
 0x160   : > { %3050 = vmatmul.mubr.msk.bf16.gmra.mrb[36].mxu0 %vm1220_vm0, %v577_v34  ;;  %v4583_v43 = vpop.f32.mrb[23].mxu1 }
 0x161   : > { %1980 = vmatprep.mubr.bf16.mxu0 %v3695_v23 }
 0x165   : > { %v4595_v47 = vpop.f32.mrb[24].mxu1 }
 0x166   : > { %v4600_v55 = vpop.f32.mrb[25].mxu1 }
 0x167   : > { %v4602_v12 = vpop.f32.mrb[26].mxu1 }
 0x168   : > { %3051 = vmatmul.mubr.msk.bf16.gmra.mrb[40].mxu0 %vm1220_vm0, %v584_v39  ;;  %v4607_v51 = vpop.f32.mrb[27].mxu1 }
 0x169   : > { %1990 = vmatprep.mubr.bf16.mxu0 %v3695_v23 }
 0x16d   : > { %v4613_v52 = vpop.f32.mrb[28].mxu1 }
 0x16e   : > { %v4618_v59 = vpop.f32.mrb[29].mxu1 }
 0x16f   : > { %v4620_v15 = vpop.f32.mrb[30].mxu1 }
 0x170   : > { %3052 = vmatmul.mubr.msk.bf16.gmra.mrb[44].mxu0 %vm1220_vm0, %v591_v49  ;;  %v4622_v60 = vpop.f32.mrb[31].mxu1 }
 0x171   : > { %2000 = vmatprep.mubr.bf16.mxu0 %v3695_v23 }
 0x178   : > { %3053 = vmatmul.mubr.msk.bf16.gmra.mrb[48].mxu0 %vm1220_vm0, %v598_v58  ;;  %v718_v58 = vld [vmem:[%s4981_s2] sm:$0x3] }
 0x179   : > { %2010 = vmatprep.mubr.bf16.mxu0 %v3695_v23  ;;  %v4687_v61 = vrot.slane %v718_v58, %v4989_v1 }
 0x17b   : > { %v1310_v53 = vadd.f32 %v4514_v3, %v4687_v61  ;;  %v1316_v3 = vadd.f32 %v4528_v19, %v4687_v61 }
 0x180   : > { %3054 = vmatmul.mubr.msk.bf16.gmra.mrb[52].mxu0 %vm1220_vm0, %v605_v18  ;;  %v4683_v18 = vrot.slane %v718_v58, %v4988_v56 }
 0x181   : > { %2020 = vmatprep.mubr.bf16.mxu0 %v3695_v23 }
 0x182   : > { %v1304_v22 = vadd.f32 %v4505_v54, %v4683_v18  ;;  %v1308_v56 = vadd.f32 %v4512_v63, %v4683_v18  ;;  %v1314_v63 = vadd.f32 %v4523_v14, %v4683_v18  ;;  %v1320_v14 = vadd.f32 %v4532_v21, %v4687_v61 }
 0x188   : > { %3055 = vmatmul.mubr.msk.bf16.gmra.mrb[56].mxu0 %vm1220_vm0, %v612_v4 }
 0x189   : > { %2030 = vmatprep.mubr.bf16.mxu0 %v3695_v23 }
 0x190   : > { %3056 = vmatmul.mubr.msk.bf16.gmra.mrb[60].mxu0 %vm1220_vm0, %v619_v17  ;;  %v1306_v17 = vadd.f32 %v4510_v62, %v4687_v61 }
 0x1b5   : > { %v4633_v5 = vpop.f32.mrb[32].mxu1 }
 0x1b6   : > { %v4635_v27 = vpop.f32.mrb[33].mxu1 }
 0x1b7   : > { %v4637_v24 = vpop.f32.mrb[34].mxu1 }
 0x1b8   : > { %v4639_v29 = vpop.f32.mrb[35].mxu1 }
 0x1bd   : > { %v4641_v7 = vpop.f32.mrb[36].mxu1 }
 0x1be   : > { %v4643_v31 = vpop.f32.mrb[37].mxu1 }
 0x1bf   : > { %v4645_v34 = vpop.f32.mrb[38].mxu1 }
 0x1c0   : > { %v4647_v23 = vpop.f32.mrb[39].mxu1 }
 0x1c5   : > { %v4649_v37 = vpop.f32.mrb[40].mxu1 }
 0x1c6   : > { %v4651_v36 = vpop.f32.mrb[41].mxu1 }
 0x1c7   : > { %v4653_v39 = vpop.f32.mrb[42].mxu1 }
 0x1c8   : > { %v4655_v45 = vpop.f32.mrb[43].mxu1 }
 0x1cd   : > { %v4657_v9 = vpop.f32.mrb[44].mxu1 }
 0x1ce   : > { %v4659_v0 = vpop.f32.mrb[45].mxu1 }
 0x1cf   : > { %4994 = vst [vmem:[#allocation6_spill] sm:$0xff] %v4659_v0  ;;  %v4661_v49 = vpop.f32.mrb[46].mxu1 }
 0x1d0   : > { %4995 = vst [vmem:[#allocation7_spill] sm:$0xff] %v4661_v49  ;;  %v4663_v50 = vpop.f32.mrb[47].mxu1 }
 0x1d1   : > { %4996 = vst [vmem:[#allocation8_spill] sm:$0xff] %v4663_v50 }
 0x1d5   : > { %v4668_v48 = vpop.f32.mrb[48].mxu1 }
 0x1d6   : > { %4998 = vst [vmem:[#allocation10_spill] sm:$0xff] %v4668_v48  ;;  %v4670_v11 = vpop.f32.mrb[49].mxu1 }
 0x1d7   : > { %4999 = vst [vmem:[#allocation11_spill] sm:$0xff] %v4670_v11  ;;  %v4673_v57 = vpop.f32.mrb[50].mxu1 }
 0x1d8   : > { %5000 = vst [vmem:[#allocation12_spill] sm:$0xff] %v4673_v57  ;;  %v4679_v2 = vpop.f32.mrb[51].mxu1 }
 0x1d9   : > { %5001 = vst [vmem:[#allocation13_spill] sm:$0xff] %v4679_v2 }
 0x1dd   : > { %v4689_v13 = vpop.f32.mrb[52].mxu1 }
 0x1de   : > { %5002 = vst [vmem:[#allocation14_spill] sm:$0xff] %v4689_v13  ;;  %v4691_v4 = vpop.f32.mrb[53].mxu1 }
 0x1df   : > { %5003 = vst [vmem:[#allocation15_spill] sm:$0xff] %v4691_v4  ;;  %v4695_v16 = vpop.f32.mrb[54].mxu1 }
 0x1e0   : > { %5004 = vst [vmem:[#allocation16_spill] sm:$0xff] %v4695_v16  ;;  %v4699_v2 = vpop.f32.mrb[55].mxu1 }
 0x1e1   : > { %5005 = vst [vmem:[#allocation17_spill] sm:$0xff] %v4699_v2 }
 0x1e5   : > { %v4705_v62 = vpop.f32.mrb[56].mxu1 }
 0x1e6   : > { %5006 = vst [vmem:[#allocation18_spill] sm:$0xff] %v4705_v62  ;;  %v4707_v2 = vpop.f32.mrb[57].mxu1 }
 0x1e7   : > { %5007 = vst [vmem:[#allocation19_spill] sm:$0xff] %v4707_v2  ;;  %v4711_v0 = vpop.f32.mrb[58].mxu1 }
 0x1e8   : > { %5008 = vst [vmem:[#allocation20_spill] sm:$0xff] %v4711_v0 }
 0x1eb   : > { %v1882_v44 = vpop.f32.mrb[0].mxu0 }
 0x1ec   : > { %v3131_v58 = vadd.f32 %v1882_v44, %v1304_v22  ;;  %v1884_v1 = vpop.f32.mrb[1].mxu0 }
 0x1ed   : > { %v3133_v4 = vadd.f32 %v1884_v1, %v1306_v17  ;;  %v1886_v13 = vpop.f32.mrb[2].mxu0 }
 0x1ee   : > { %v2041_v57 = vmul.f32 0.2, %v3131_v58  ;;  %v3135_v54 = vadd.f32 %v1886_v13, %v1308_v56  ;;  %v1888_v11 = vpop.f32.mrb[3].mxu0 }
 0x1ef   : > { %v2042_v16 = vmul.f32 0.2, %v3133_v4  ;;  %v3137_v48 = vadd.f32 %v1888_v11, %v1310_v53  ;;  %v4715_v53 = vpop.f32.mrb[59].mxu1  ;;  %v1318_v11 = vadd.f32 %v4530_v20, %v4683_v18 }
 0x1f0   : > { %v2043_v50 = vmul.f32 0.2, %v3135_v54  ;;  %v2105_v44 = vmax.f32 %v3131_v58, %v2041_v57 }
 0x1f1   : > { %v2044_v49 = vmul.f32 0.2, %v3137_v48  ;;  %v2106_v56 = vmax.f32 %v3133_v4, %v2042_v16  ;;  %v4721_v16 = vpop.f32.mrb[60].mxu1 }
 0x1f2   : > { %v2107_v22 = vmax.f32 %v3135_v54, %v2043_v50 }
 0x1f3   : > { %v2108_v1 = vmax.f32 %v3137_v48, %v2044_v49  ;;  %v1892_v13 = vpop.f32.mrb[4].mxu0 }
 0x1f4   : > { %v2169_v17 = vpack.c.bf16 %v2107_v22, %v2105_v44  ;;  %v3139_v2 = vadd.f32 %v1892_v13, %v1314_v63  ;;  %v1894_v62 = vpop.f32.mrb[5].mxu0  ;;  %v4723_v44 = vpop.f32.mrb[61].mxu1  ;;  %v1324_v63 = vadd.f32 %v4535_v6, %v4683_v18  ;;  %v1330_v6 = vadd.f32 %v4544_v26, %v4687_v61 }
 0x1f5   : > { %v3141_v50 = vadd.f32 %v1894_v62, %v1316_v3  ;;  %v1896_v57 = vpop.f32.mrb[6].mxu0  ;;  %v2170_v58 = vpack.c.bf16 %v2108_v1, %v2106_v56  ;;  %v4727_v22 = vpop.f32.mrb[62].mxu1  ;;  %v1326_v3 = vadd.f32 %v4540_v25, %v4687_v61  ;;  %v1336_v26 = vadd.f32 %v4552_v32, %v4687_v61 }
 0x1f6   : > { %v2045_v54 = vmul.f32 0.2, %v3139_v2  ;;  %v3143_v0 = vadd.f32 %v1896_v57, %v1318_v11  ;;  %v1898_v19 = vpop.f32.mrb[7].mxu0  ;;  %v4731_v11 = vpop.f32.mrb[63].mxu1 }
 0x1f7   : > { %v2046_v4 = vmul.f32 0.2, %v3141_v50  ;;  %v3145_v49 = vadd.f32 %v1898_v19, %v1320_v14  ;;  %2437 = vmatprep.mubr.bf16.mxu1 %v2170_v58 }
 0x1f8   : > { %v2047_v48 = vmul.f32 0.2, %v3143_v0  ;;  %2438 = vmatmul.mubr.bf16.vlgmr.msra.gmra.mrb[64].mxu1 %v2169_v17  ;;  %v2109_v21 = vmax.f32 %v3139_v2, %v2045_v54  ;;  %v1328_v17 = vadd.f32 %v4542_v28, %v4683_v18  ;;  %v1334_v28 = vadd.f32 %v4547_v30, %v4683_v18 }
 0x1f9   : > { %v2048_v20 = vmul.f32 0.2, %v3145_v49  ;;  %v2110_v56 = vmax.f32 %v3141_v50, %v2046_v4 }
 0x1fa   : > { %v2111_v62 = vmax.f32 %v3143_v0, %v2047_v48 }
 0x1fb   : > { %v2112_v1 = vmax.f32 %v3145_v49, %v2048_v20  ;;  %v1902_v13 = vpop.f32.mrb[8].mxu0 }
 0x1fc   : > { %v3147_v14 = vadd.f32 %v1902_v13, %v1324_v63  ;;  %v1904_v57 = vpop.f32.mrb[9].mxu0  ;;  %v2171_v58 = vpack.c.bf16 %v2111_v62, %v2109_v21 }
 0x1fd   : > { %v3149_v0 = vadd.f32 %v1904_v57, %v1326_v3  ;;  %v1906_v2 = vpop.f32.mrb[10].mxu0  ;;  %v2172_v54 = vpack.c.bf16 %v2112_v1, %v2110_v56  ;;  %v1338_v1 = vadd.f32 %v4554_v33, %v4683_v18  ;;  %v1344_v33 = vadd.f32 %v4559_v35, %v4683_v18 }
 0x1fe   : > { %v2049_v19 = vmul.f32 0.2, %v3147_v14  ;;  %v3151_v48 = vadd.f32 %v1906_v2, %v1328_v17  ;;  %v1908_v25 = vpop.f32.mrb[11].mxu0 }
 0x1ff   : > { %v2050_v50 = vmul.f32 0.2, %v3149_v0  ;;  %v3153_v4 = vadd.f32 %v1908_v25, %v1330_v6  ;;  %2447 = vmatprep.mubr.bf16.mxu1 %v2172_v54 }
 0x200   : > { %v2051_v49 = vmul.f32 0.2, %v3151_v48  ;;  %2448 = vmatmul.mubr.bf16.gmra.mrb[68].mxu1 %v2171_v58  ;;  %v2113_v63 = vmax.f32 %v3147_v14, %v2049_v19  ;;  %v1340_v58 = vadd.f32 %v4556_v8, %v4687_v61  ;;  %v1346_v8 = vadd.f32 %v4564_v38, %v4687_v61 }
 0x201   : > { %v2052_v20 = vmul.f32 0.2, %v3153_v4  ;;  %v2114_v62 = vmax.f32 %v3149_v0, %v2050_v50 }
 0x202   : > { %v2115_v21 = vmax.f32 %v3151_v48, %v2051_v49 }
 0x203   : > { %v2116_v3 = vmax.f32 %v3153_v4, %v2052_v20  ;;  %v1912_v56 = vpop.f32.mrb[12].mxu0 }
 0x204   : > { %v3155_v13 = vadd.f32 %v1912_v56, %v1334_v28  ;;  %v1914_v17 = vpop.f32.mrb[13].mxu0  ;;  %v2173_v57 = vpack.c.bf16 %v2115_v21, %v2113_v63  ;;  %v1348_v63 = vadd.f32 %v4566_v41, %v4683_v18  ;;  %v1354_v41 = vadd.f32 %v4571_v40, %v4683_v18 }
 0x205   : > { %v3157_v6 = vadd.f32 %v1914_v17, %v1336_v26  ;;  %v1916_v2 = vpop.f32.mrb[14].mxu0  ;;  %v2174_v30 = vpack.c.bf16 %v2116_v3, %v2114_v62  ;;  %v1350_v3 = vadd.f32 %v4568_v42, %v4687_v61  ;;  %v1356_v42 = vadd.f32 %v4576_v10, %v4687_v61 }
 0x206   : > { %v2053_v14 = vmul.f32 0.2, %v3155_v13  ;;  %v3159_v54 = vadd.f32 %v1916_v2, %v1338_v1  ;;  %v1918_v19 = vpop.f32.mrb[15].mxu0 }
 0x207   : > { %v2054_v48 = vmul.f32 0.2, %v3157_v6  ;;  %v3161_v32 = vadd.f32 %v1918_v19, %v1340_v58  ;;  %2457 = vmatprep.mubr.bf16.mxu1 %v2174_v30 }
 0x208   : > { %v2055_v0 = vmul.f32 0.2, %v3159_v54  ;;  %2458 = vmatmul.mubr.bf16.gmra.mrb[72].mxu1 %v2173_v57  ;;  %v2117_v50 = vmax.f32 %v3155_v13, %v2053_v14 }
 0x209   : > { %v2056_v25 = vmul.f32 0.2, %v3161_v32  ;;  %v2118_v49 = vmax.f32 %v3157_v6, %v2054_v48 }
 0x20a   : > { %v2119_v4 = vmax.f32 %v3159_v54, %v2055_v0 }
 0x20b   : > { %v2120_v20 = vmax.f32 %v3161_v32, %v2056_v25  ;;  %v1922_v28 = vpop.f32.mrb[16].mxu0  ;;  %v1358_v32 = vadd.f32 %v4578_v46, %v4683_v18  ;;  %v1364_v46 = vadd.f32 %v4595_v47, %v4683_v18 }
 0x20c   : > { %v3163_v21 = vadd.f32 %v1922_v28, %v1344_v33  ;;  %v1924_v26 = vpop.f32.mrb[17].mxu0  ;;  %v2175_v62 = vpack.c.bf16 %v2119_v4, %v2117_v50  ;;  %v1360_v50 = vadd.f32 %v4583_v43, %v4687_v61  ;;  %v1366_v43 = vadd.f32 %v4600_v55, %v4687_v61 }
 0x20d   : > { %v3165_v56 = vadd.f32 %v1924_v26, %v1346_v8  ;;  %v1926_v1 = vpop.f32.mrb[18].mxu0  ;;  %v2176_v35 = vpack.c.bf16 %v2120_v20, %v2118_v49 }
 0x20e   : > { %v2057_v13 = vmul.f32 0.2, %v3163_v21  ;;  %v3167_v17 = vadd.f32 %v1926_v1, %v1348_v63  ;;  %v1928_v57 = vpop.f32.mrb[19].mxu0 }
 0x20f   : > { %v2058_v58 = vmul.f32 0.2, %v3165_v56  ;;  %v3169_v38 = vadd.f32 %v1928_v57, %v1350_v3  ;;  %2467 = vmatprep.mubr.bf16.mxu1 %v2176_v35 }
 0x210   : > { %v2059_v6 = vmul.f32 0.2, %v3167_v17  ;;  %2468 = vmatmul.mubr.bf16.gmra.mrb[76].mxu1 %v2175_v62  ;;  %v2121_v30 = vmax.f32 %v3163_v21, %v2057_v13  ;;  %v1368_v13 = vadd.f32 %v4602_v12, %v4683_v18  ;;  %v1374_v12 = vadd.f32 %v4613_v52, %v4683_v18 }
 0x211   : > { %v2060_v2 = vmul.f32 0.2, %v3169_v38  ;;  %v2122_v54 = vmax.f32 %v3165_v56, %v2058_v58 }
 0x212   : > { %v2123_v14 = vmax.f32 %v3167_v17, %v2059_v6 }
 0x213   : > { %v2124_v19 = vmax.f32 %v3169_v38, %v2060_v2  ;;  %v1932_v48 = vpop.f32.mrb[20].mxu0  ;;  %v1370_v38 = vadd.f32 %v4607_v51, %v4687_v61  ;;  %v1376_v51 = vadd.f32 %v4618_v59, %v4687_v61 }
 0x214   : > { %v3171_v0 = vadd.f32 %v1932_v48, %v1354_v41  ;;  %v1934_v25 = vpop.f32.mrb[21].mxu0  ;;  %v2177_v33 = vpack.c.bf16 %v2123_v14, %v2121_v30 }
 0x215   : > { %v3173_v4 = vadd.f32 %v1934_v25, %v1356_v42  ;;  %v1936_v8 = vpop.f32.mrb[22].mxu0  ;;  %v2178_v40 = vpack.c.bf16 %v2124_v19, %v2122_v54 }
 0x216   : > { %v2061_v49 = vmul.f32 0.2, %v3171_v0  ;;  %v3175_v20 = vadd.f32 %v1936_v8, %v1358_v32  ;;  %v1938_v28 = vpop.f32.mrb[23].mxu0 }
 0x217   : > { %v2062_v63 = vmul.f32 0.2, %v3173_v4  ;;  %v3177_v10 = vadd.f32 %v1938_v28, %v1360_v50  ;;  %2477 = vmatprep.mubr.bf16.mxu1 %v2178_v40  ;;  %v1378_v50 = vadd.f32 %v4620_v15, %v4683_v18  ;;  %v3194_v15 = vadd.f32 %v4633_v5, %v4683_v18 }
 0x218   : > { %v2063_v21 = vmul.f32 0.2, %v3175_v20  ;;  %2478 = vmatmul.mubr.bf16.gmra.mrb[80].mxu1 %v2177_v33  ;;  %v2125_v62 = vmax.f32 %v3171_v0, %v2061_v49  ;;  %v1380_v49 = vadd.f32 %v4622_v60, %v4687_v61  ;;  %v3196_v60 = vadd.f32 %v4635_v27, %v4687_v61 }
 0x219   : > { %v2064_v26 = vmul.f32 0.2, %v3177_v10  ;;  %v2126_v56 = vmax.f32 %v3173_v4, %v2062_v63 }
 0x21a   : > { %v2127_v3 = vmax.f32 %v3175_v20, %v2063_v21 }
 0x21b   : > { %v2128_v1 = vmax.f32 %v3177_v10, %v2064_v26  ;;  %v1942_v35 = vpop.f32.mrb[24].mxu0 }
 0x21c   : > { %v3179_v17 = vadd.f32 %v1942_v35, %v1364_v46  ;;  %v1944_v57 = vpop.f32.mrb[25].mxu0  ;;  %v2179_v58 = vpack.c.bf16 %v2127_v3, %v2125_v62 }
 0x21d   : > { %v3181_v6 = vadd.f32 %v1944_v57, %v1366_v43  ;;  %v1946_v2 = vpop.f32.mrb[26].mxu0  ;;  %v2180_v47 = vpack.c.bf16 %v2128_v1, %v2126_v56 }
 0x21e   : > { %v2065_v41 = vmul.f32 0.2, %v3179_v17  ;;  %v3183_v30 = vadd.f32 %v1946_v2, %v1368_v13  ;;  %v1948_v14 = vpop.f32.mrb[27].mxu0  ;;  %v3198_v13 = vadd.f32 %v4637_v24, %v4683_v18  ;;  %v3202_v24 = vadd.f32 %v4641_v7, %v4683_v18 }
 0x21f   : > { %v2066_v42 = vmul.f32 0.2, %v3181_v6  ;;  %v3185_v55 = vadd.f32 %v1948_v14, %v1370_v38  ;;  %2487 = vmatprep.mubr.bf16.mxu1 %v2180_v47  ;;  %v3200_v38 = vadd.f32 %v4639_v29, %v4687_v61  ;;  %v3204_v29 = vadd.f32 %v4643_v31, %v4687_v61 }
 0x220   : > { %v2067_v54 = vmul.f32 0.2, %v3183_v30  ;;  %2488 = vmatmul.mubr.bf16.gmra.mrb[84].mxu1 %v2179_v58  ;;  %v2129_v48 = vmax.f32 %v3179_v17, %v2065_v41 }
 0x221   : > { %v2068_v19 = vmul.f32 0.2, %v3185_v55  ;;  %v2130_v0 = vmax.f32 %v3181_v6, %v2066_v42 }
 0x222   : > { %v2131_v32 = vmax.f32 %v3183_v30, %v2067_v54 }
 0x223   : > { %v2132_v25 = vmax.f32 %v3185_v55, %v2068_v19  ;;  %v1952_v33 = vpop.f32.mrb[28].mxu0 }
 0x224   : > { %v3187_v4 = vadd.f32 %v1952_v33, %v1374_v12  ;;  %v1954_v8 = vpop.f32.mrb[29].mxu0  ;;  %v2181_v40 = vpack.c.bf16 %v2131_v32, %v2129_v48 }
 0x225   : > { %v3189_v20 = vadd.f32 %v1954_v8, %v1376_v51  ;;  %v1956_v28 = vpop.f32.mrb[30].mxu0  ;;  %v2182_v52 = vpack.c.bf16 %v2132_v25, %v2130_v0  ;;  %v3206_v51 = vadd.f32 %v4645_v34, %v4683_v18  ;;  %v3210_v34 = vadd.f32 %v4649_v37, %v4683_v18 }
 0x226   : > { %v2069_v63 = vmul.f32 0.2, %v3187_v4  ;;  %v3191_v10 = vadd.f32 %v1956_v28, %v1378_v50  ;;  %v1958_v21 = vpop.f32.mrb[31].mxu0  ;;  %v3208_v50 = vadd.f32 %v4647_v23, %v4687_v61  ;;  %v3212_v23 = vadd.f32 %v4651_v36, %v4687_v61 }
 0x227   : > { %v2070_v26 = vmul.f32 0.2, %v3189_v20  ;;  %v3193_v59 = vadd.f32 %v1958_v21, %v1380_v49  ;;  %2497 = vmatprep.mubr.bf16.mxu1 %v2182_v52 }
 0x228   : > { %v2071_v46 = vmul.f32 0.2, %v3191_v10  ;;  %2498 = vmatmul.mubr.bf16.gmra.mrb[88].mxu1 %v2181_v40  ;;  %v2133_v3 = vmax.f32 %v3187_v4, %v2069_v63 }
 0x229   : > { %v2072_v62 = vmul.f32 0.2, %v3193_v59  ;;  %v2134_v56 = vmax.f32 %v3189_v20, %v2070_v26 }
 0x22a   : > { %v2135_v43 = vmax.f32 %v3191_v10, %v2071_v46 }
 0x22b   : > { %v2136_v1 = vmax.f32 %v3193_v59, %v2072_v62  ;;  %v1962_v35 = vpop.f32.mrb[32].mxu0  ;;  %v3214_v62 = vadd.f32 %v4653_v39, %v4683_v18  ;;  %v3218_v39 = vadd.f32 %v4657_v9, %v4683_v18 }
 0x22c   : > { %v3195_v17 = vadd.f32 %v3194_v15, %v1962_v35  ;;  %v1964_v57 = vpop.f32.mrb[33].mxu0  ;;  %v2183_v58 = vpack.c.bf16 %v2135_v43, %v2133_v3 }
 0x22d   : > { %v3197_v6 = vadd.f32 %v3196_v60, %v1964_v57  ;;  %v1966_v2 = vpop.f32.mrb[34].mxu0  ;;  %v2184_v5 = vpack.c.bf16 %v2136_v1, %v2134_v56  ;;  %v3216_v60 = vadd.f32 %v4655_v45, %v4687_v61 }
 0x22e   : > { %v2073_v47 = vmul.f32 0.2, %v3195_v17  ;;  %v3199_v41 = vadd.f32 %v3198_v13, %v1966_v2  ;;  %v1968_v30 = vpop.f32.mrb[35].mxu0 }
 0x22f   : > { %v2074_v14 = vmul.f32 0.2, %v3197_v6  ;;  %v3201_v27 = vadd.f32 %v3200_v38, %v1968_v30  ;;  %2507 = vmatprep.mubr.bf16.mxu1 %v2184_v5  ;;  %v5009_v5 = vld [vmem:[#allocation6_spill] sm:$0xff] }
 0x230   : > { %v2075_v42 = vmul.f32 0.2, %v3199_v41  ;;  %2508 = vmatmul.mubr.bf16.gmra.mrb[92].mxu1 %v2183_v58  ;;  %v2137_v54 = vmax.f32 %v3195_v17, %v2073_v47  ;;  %v3220_v45 = vadd.f32 %v5009_v5, %v4687_v61  ;;  %v5018_v5 = vld [vmem:[#allocation16_spill] sm:$0xff] }
 0x231   : > { %v2076_v55 = vmul.f32 0.2, %v3201_v27  ;;  %v2138_v12 = vmax.f32 %v3197_v6, %v2074_v14  ;;  %v5010_v14 = vld [vmem:[#allocation7_spill] sm:$0xff] }
 0x232   : > { %v2139_v19 = vmax.f32 %v3199_v41, %v2075_v42 }
 0x233   : > { %v2140_v48 = vmax.f32 %v3201_v27, %v2076_v55  ;;  %v1972_v32 = vpop.f32.mrb[36].mxu0  ;;  %v3222_v27 = vadd.f32 %v5010_v14, %v4683_v18  ;;  %v5019_v14 = vld [vmem:[#allocation17_spill] sm:$0xff] }
 0x234   : > { %v3203_v0 = vadd.f32 %v3202_v24, %v1972_v32  ;;  %v1974_v25 = vpop.f32.mrb[37].mxu0  ;;  %v2185_v33 = vpack.c.bf16 %v2139_v19, %v2137_v54  ;;  %v5011_v54 = vld [vmem:[#allocation8_spill] sm:$0xff] }
 0x235   : > { %v3205_v4 = vadd.f32 %v3204_v29, %v1974_v25  ;;  %v1976_v8 = vpop.f32.mrb[38].mxu0  ;;  %v2186_v7 = vpack.c.bf16 %v2140_v48, %v2138_v12  ;;  %v3224_v19 = vadd.f32 %v5011_v54, %v4687_v61 }
 0x236   : > { %v2077_v40 = vmul.f32 0.2, %v3203_v0  ;;  %v3207_v49 = vadd.f32 %v3206_v51, %v1976_v8  ;;  %v1978_v20 = vpop.f32.mrb[39].mxu0 }
 0x237   : > { %v2078_v28 = vmul.f32 0.2, %v3205_v4  ;;  %v3209_v31 = vadd.f32 %v3208_v50, %v1978_v20  ;;  %2517 = vmatprep.mubr.bf16.mxu1 %v2186_v7 }
 0x238   : > { %v2079_v52 = vmul.f32 0.2, %v3207_v49  ;;  %2518 = vmatmul.mubr.bf16.gmra.mrb[96].mxu1 %v2185_v33  ;;  %v2141_v10 = vmax.f32 %v3203_v0, %v2077_v40 }
 0x239   : > { %v2080_v63 = vmul.f32 0.2, %v3209_v31  ;;  %v2142_v26 = vmax.f32 %v3205_v4, %v2078_v28  ;;  %v5012_v4 = vld [vmem:[#allocation10_spill] sm:$0xff] }
 0x23a   : > { %v2143_v21 = vmax.f32 %v3207_v49, %v2079_v52  ;;  %v3226_v8 = vadd.f32 %v5012_v4, %v4683_v18  ;;  %v5013_v49 = vld [vmem:[#allocation11_spill] sm:$0xff] }
 0x23b   : > { %v2144_v59 = vmax.f32 %v3209_v31, %v2080_v63  ;;  %v1982_v46 = vpop.f32.mrb[40].mxu0  ;;  %v3228_v20 = vadd.f32 %v5013_v49, %v4687_v61  ;;  %v5014_v63 = vld [vmem:[#allocation12_spill] sm:$0xff] }
 0x23c   : > { %v3211_v15 = vadd.f32 %v3210_v34, %v1982_v46  ;;  %v1984_v3 = vpop.f32.mrb[41].mxu0  ;;  %v2187_v43 = vpack.c.bf16 %v2143_v21, %v2141_v10  ;;  %v3230_v34 = vadd.f32 %v5014_v63, %v4683_v18  ;;  %v5022_v49 = vld [vmem:[#allocation20_spill] sm:$0xff]  ;;  %v3248_v63 = vadd.f32 %v4715_v53, %v4687_v61 }
 0x23d   : > { %v3213_v56 = vadd.f32 %v3212_v23, %v1984_v3  ;;  %v1986_v1 = vpop.f32.mrb[42].mxu0  ;;  %v2188_v37 = vpack.c.bf16 %v2144_v59, %v2142_v26  ;;  %v5015_v26 = vld [vmem:[#allocation13_spill] sm:$0xff]  ;;  %v3252_v53 = vadd.f32 %v4723_v44, %v4687_v61 }
 0x23e   : > { %v2081_v35 = vmul.f32 0.2, %v3211_v15  ;;  %v3215_v13 = vadd.f32 %v3214_v62, %v1986_v1  ;;  %v1988_v17 = vpop.f32.mrb[43].mxu0  ;;  %v3232_v59 = vadd.f32 %v5015_v26, %v4687_v61 }
 0x23f   : > { %v2082_v57 = vmul.f32 0.2, %v3213_v56  ;;  %v3217_v36 = vadd.f32 %v3216_v60, %v1988_v17  ;;  %2527 = vmatprep.mubr.bf16.mxu1 %v2188_v37 }
 0x240   : > { %v2083_v58 = vmul.f32 0.2, %v3215_v13  ;;  %2528 = vmatmul.mubr.bf16.gmra.mrb[100].mxu1 %v2187_v43  ;;  %v2145_v6 = vmax.f32 %v3211_v15, %v2081_v35 }
 0x241   : > { %v2084_v38 = vmul.f32 0.2, %v3217_v36  ;;  %v2146_v47 = vmax.f32 %v3213_v56, %v2082_v57 }
 0x242   : > { %v2147_v2 = vmax.f32 %v3215_v13, %v2083_v58  ;;  %v5016_v13 = vld [vmem:[#allocation14_spill] sm:$0xff]  ;;  %v5017_v58 = vld [vmem:[#allocation15_spill] sm:$0xff] }
 0x243   : > { %v2148_v41 = vmax.f32 %v3217_v36, %v2084_v38  ;;  %v1992_v30 = vpop.f32.mrb[44].mxu0  ;;  %v3234_v17 = vadd.f32 %v5016_v13, %v4683_v18  ;;  %v3236_v38 = vadd.f32 %v5017_v58, %v4687_v61  ;;  %v3254_v13 = vadd.f32 %v4727_v22, %v4683_v18 }
 0x244   : > { %v3219_v42 = vadd.f32 %v3218_v39, %v1992_v30  ;;  %v1994_v55 = vpop.f32.mrb[45].mxu0  ;;  %v2189_v24 = vpack.c.bf16 %v2147_v2, %v2145_v6  ;;  %v3256_v58 = vadd.f32 %v4731_v11, %v4687_v61  ;;  %v5023_v11 = vld [vmem:[#allocation9_spill] sm:$0xff] }
 0x245   : > { %v3221_v29 = vadd.f32 %v3220_v45, %v1994_v55  ;;  %v1996_v12 = vpop.f32.mrb[46].mxu0  ;;  %v2190_v9 = vpack.c.bf16 %v2148_v41, %v2146_v47  ;;  %v3238_v45 = vadd.f32 %v5018_v5, %v4683_v18 }
 0x246   : > { %v2085_v48 = vmul.f32 0.2, %v3219_v42  ;;  %v3223_v32 = vadd.f32 %v3222_v27, %v1996_v12  ;;  %v1998_v51 = vpop.f32.mrb[47].mxu0  ;;  %v3240_v27 = vadd.f32 %v5019_v14, %v4687_v61 }
 0x247   : > { %v2086_v0 = vmul.f32 0.2, %v3221_v29  ;;  %v3225_v25 = vadd.f32 %v3224_v19, %v1998_v51  ;;  %2537 = vmatprep.mubr.bf16.mxu1 %v2190_v9  ;;  %v5020_v51 = vld [vmem:[#allocation18_spill] sm:$0xff] }
 0x248   : > { %v2087_v33 = vmul.f32 0.2, %v3223_v32  ;;  %2538 = vmatmul.mubr.bf16.gmra.mrb[104].mxu1 %v2189_v24  ;;  %v2149_v7 = vmax.f32 %v3219_v42, %v2085_v48 }
 0x249   : > { %v2088_v50 = vmul.f32 0.2, %v3225_v25  ;;  %v2150_v28 = vmax.f32 %v3221_v29, %v2086_v0  ;;  %v3242_v0 = vadd.f32 %v5020_v51, %v4683_v18 }
 0x24a   : > { %v2151_v40 = vmax.f32 %v3223_v32, %v2087_v33 }
 0x24b   : > { %v2152_v31 = vmax.f32 %v3225_v25, %v2088_v50  ;;  %v2002_v52 = vpop.f32.mrb[48].mxu0  ;;  %v5021_v50 = vld [vmem:[#allocation19_spill] sm:$0xff] }
 0x24c   : > { %v3227_v10 = vadd.f32 %v3226_v8, %v2002_v52  ;;  %v2004_v21 = vpop.f32.mrb[49].mxu0  ;;  %v2191_v23 = vpack.c.bf16 %v2151_v40, %v2149_v7  ;;  %v3244_v4 = vadd.f32 %v5021_v50, %v4687_v61  ;;  %v2233_v61 = vld [vmem:[%s4983_s4] sm:$0x3] }
 0x24d   : > { %v3229_v46 = vadd.f32 %v3228_v20, %v2004_v21  ;;  %v2006_v62 = vpop.f32.mrb[50].mxu0  ;;  %v2192_v15 = vpack.c.bf16 %v2152_v31, %v2150_v28  ;;  %v3246_v20 = vadd.f32 %v5022_v49, %v4683_v18 }
 0x24e   : > { %v2089_v3 = vmul.f32 0.2, %v3227_v10  ;;  %v3231_v43 = vadd.f32 %v3230_v34, %v2006_v62  ;;  %v2008_v60 = vpop.f32.mrb[51].mxu0 }
 0x24f   : > { %v2090_v56 = vmul.f32 0.2, %v3229_v46  ;;  %v3233_v1 = vadd.f32 %v3232_v59, %v2008_v60  ;;  %2547 = vmatprep.mubr.bf16.mxu1 %v2192_v15 }
 0x250   : > { %v2091_v37 = vmul.f32 0.2, %v3231_v43  ;;  %2548 = vmatmul.mubr.bf16.gmra.mrb[108].mxu1 %v2191_v23  ;;  %v2153_v57 = vmax.f32 %v3227_v10, %v2089_v3 }
 0x251   : > { %v2092_v35 = vmul.f32 0.2, %v3233_v1  ;;  %v2154_v39 = vmax.f32 %v3229_v46, %v2090_v56 }
 0x252   : > { %v2155_v36 = vmax.f32 %v3231_v43, %v2091_v37  ;;  %v3250_v43 = vadd.f32 %v4721_v16, %v4683_v18 }
 0x253   : > { %v2156_v6 = vmax.f32 %v3233_v1, %v2092_v35  ;;  %v2012_v2 = vpop.f32.mrb[52].mxu0 }
 0x254   : > { %v3235_v47 = vadd.f32 %v3234_v17, %v2012_v2  ;;  %v2014_v41 = vpop.f32.mrb[53].mxu0  ;;  %v2193_v30 = vpack.c.bf16 %v2155_v36, %v2153_v57 }
 0x255   : > { %v3237_v42 = vadd.f32 %v3236_v38, %v2014_v41  ;;  %v2016_v55 = vpop.f32.mrb[54].mxu0  ;;  %v2194_v24 = vpack.c.bf16 %v2156_v6, %v2154_v39 }
 0x256   : > { %v2093_v54 = vmul.f32 0.2, %v3235_v47  ;;  %v3239_v19 = vadd.f32 %v3238_v45, %v2016_v55  ;;  %v2018_v29 = vpop.f32.mrb[55].mxu0  ;;  %v5024_v55 = vsub.s32 0, %v5023_v11 }
 0x257   : > { %v2094_v12 = vmul.f32 0.2, %v3237_v42  ;;  %v3241_v9 = vadd.f32 %v3240_v27, %v2018_v29  ;;  %2557 = vmatprep.mubr.bf16.mxu1 %v2194_v24 }
 0x258   : > { %v2095_v48 = vmul.f32 0.2, %v3239_v19  ;;  %2558 = vmatmul.mubr.bf16.gmra.mrb[112].mxu1 %v2193_v30  ;;  %v2157_v25 = vmax.f32 %v3235_v47, %v2093_v54  ;;  %v4846_v24 = vrot.slane %v2233_v61, %v5024_v55  ;;  %v5025_v54 = vsub.s32 1, %v5023_v11 }
 0x259   : > { %v2096_v32 = vmul.f32 0.2, %v3241_v9  ;;  %v2158_v8 = vmax.f32 %v3237_v42, %v2094_v12 }
 0x25a   : > { %v2159_v33 = vmax.f32 %v3239_v19, %v2095_v48  ;;  %v4850_v19 = vrot.slane %v2233_v61, %v5025_v54 }
 0x25b   : > { %v2160_v7 = vmax.f32 %v3241_v9, %v2096_v32  ;;  %v2022_v40 = vpop.f32.mrb[56].mxu0 }
 0x25c   : > { %v3243_v28 = vadd.f32 %v3242_v0, %v2022_v40  ;;  %v2024_v31 = vpop.f32.mrb[57].mxu0  ;;  %v2195_v52 = vpack.c.bf16 %v2159_v33, %v2157_v25  ;;  %v3696_v33 = vmov 1966171168  }
 0x25d   : > { %v3245_v34 = vadd.f32 %v3244_v4, %v2024_v31  ;;  %v2026_v10 = vpop.f32.mrb[58].mxu0  ;;  %v2196_v21 = vpack.c.bf16 %v2160_v7, %v2158_v8  ;;  %v2771_v50 = vunpack.c.l.s4 %v3696_v33  ;;  %v4859_v40 = vld.sshfl [vmem:[%s4984_s5] sm:$0x11 pattern:$0x75316420] }
 0x25e   : > { %v2097_v23 = vmul.f32 0.2, %v3243_v28  ;;  %v3247_v26 = vadd.f32 %v3246_v20, %v2026_v10  ;;  %v2028_v59 = vpop.f32.mrb[59].mxu0 }
 0x25f   : > { %v2098_v46 = vmul.f32 0.2, %v3245_v34  ;;  %v3249_v62 = vadd.f32 %v3248_v63, %v2028_v59  ;;  %2567 = vmatprep.mubr.bf16.mxu1 %v2196_v21  ;;  %v2772_v49 = vunpack.c.0.s8 %v2771_v50 }
 0x260   : > { %v2099_v15 = vmul.f32 0.2, %v3247_v26  ;;  %2568 = vmatmul.mubr.bf16.gmra.mrb[116].mxu1 %v2195_v52  ;;  %v2161_v60 = vmax.f32 %v3243_v28, %v2097_v23  ;;  %v2769_v28 = vcombine.high %v4859_v40, %v4859_v40 }
 0x261   : > { %v2100_v3 = vmul.f32 0.2, %v3249_v62  ;;  %v2162_v1 = vmax.f32 %v3245_v34, %v2098_v46  ;;  %v4864_v63 = vsub.s32 %v2772_v49, %v5023_v11 }
 0x262   : > { %v2163_v56 = vmax.f32 %v3247_v26, %v2099_v15 }
 0x263   : > { %v2164_v37 = vmax.f32 %v3249_v62, %v2100_v3  ;;  %v2032_v35 = vpop.f32.mrb[60].mxu0  ;;  %v2783_v46 = vrot.slane %v2769_v28, %v4864_v63 }
 0x264   : > { %v3251_v17 = vadd.f32 %v3250_v43, %v2032_v35  ;;  %v2034_v57 = vpop.f32.mrb[61].mxu0  ;;  %v2197_v36 = vpack.c.bf16 %v2163_v56, %v2161_v60 }
 0x265   : > { %v3253_v38 = vadd.f32 %v3252_v53, %v2034_v57  ;;  %v2036_v39 = vpop.f32.mrb[62].mxu0  ;;  %v2198_v16 = vpack.c.bf16 %v2164_v37, %v2162_v1 }
 0x266   : > { %v2101_v6 = vmul.f32 0.2, %v3251_v17  ;;  %v3255_v2 = vadd.f32 %v3254_v13, %v2036_v39  ;;  %v2038_v5 = vpop.f32.mrb[63].mxu0 }
 0x267   : > { %v2102_v45 = vmul.f32 0.2, %v3253_v38  ;;  %v3257_v44 = vadd.f32 %v3256_v58, %v2038_v5  ;;  %2577 = vmatprep.mubr.bf16.mxu1 %v2198_v16 }
 0x268   : > { %v2103_v47 = vmul.f32 0.2, %v3255_v2  ;;  %2578 = vmatmul.mubr.bf16.gmra.mrb[120].mxu1 %v2197_v36  ;;  %v2165_v30 = vmax.f32 %v3251_v17, %v2101_v6 }
 0x269   : > { %v2104_v41 = vmul.f32 0.2, %v3257_v44  ;;  %v2166_v22 = vmax.f32 %v3253_v38, %v2102_v45 }
 0x26a   : > { %v2167_v18 = vmax.f32 %v3255_v2, %v2103_v47 }
 0x26b   : > { %v2168_v14 = vmax.f32 %v3257_v44, %v2104_v41 }
 0x26c   : > { %v2199_v27 = vpack.c.bf16 %v2167_v18, %v2165_v30 }
 0x26d   : > { %v2200_v42 = vpack.c.bf16 %v2168_v14, %v2166_v22 }
 0x26f   : > { %2587 = vmatprep.mubr.bf16.mxu1 %v2200_v42 }
 0x270   : > { %2588 = vmatmul.mubr.bf16.gmra.mrb[124].mxu1 %v2199_v27 }
 0x271   : > { %2818 = vmatprep.mubr.bf16.mxu1 %v2783_v46 }
 0x2cb   : > { %v2439_v29 = vpop.f32.mrb[64].mxu1 }
 0x2cc   : > { %v2440_v12 = vadd.f32 %v2439_v29, %v4846_v24  ;;  %v2441_v9 = vpop.f32.mrb[65].mxu1 }
 0x2cd   : > { %v2442_v48 = vadd.f32 %v2441_v9, %v4850_v19  ;;  %v2443_v32 = vpop.f32.mrb[66].mxu1 }
 0x2ce   : > { %v2598_v51 = vmul.f32 0.2, %v2440_v12  ;;  %v2444_v0 = vadd.f32 %v2443_v32, %v4846_v24  ;;  %v2445_v25 = vpop.f32.mrb[67].mxu1 }
 0x2cf   : > { %v2599_v4 = vmul.f32 0.2, %v2442_v48  ;;  %v2446_v8 = vadd.f32 %v2445_v25, %v4850_v19 }
 0x2d0   : > { %v2600_v7 = vmul.f32 0.2, %v2444_v0  ;;  %v2662_v31 = vmax.f32 %v2440_v12, %v2598_v51 }
 0x2d1   : > { %v2601_v20 = vmul.f32 0.2, %v2446_v8  ;;  %v2663_v34 = vmax.f32 %v2442_v48, %v2599_v4 }
 0x2d2   : > { %v2664_v52 = vmax.f32 %v2444_v0, %v2600_v7 }
 0x2d3   : > { %v2665_v10 = vmax.f32 %v2446_v8, %v2601_v20  ;;  %v2449_v21 = vpop.f32.mrb[68].mxu1 }
 0x2d4   : > { %v2727_v23 = vpack.c.bf16 %v2664_v52, %v2662_v31  ;;  %v2450_v26 = vadd.f32 %v2449_v21, %v4846_v24  ;;  %v2451_v59 = vpop.f32.mrb[69].mxu1 }
 0x2d5   : > { %v2452_v62 = vadd.f32 %v2451_v59, %v4850_v19  ;;  %v2453_v15 = vpop.f32.mrb[70].mxu1  ;;  %v2728_v3 = vpack.c.bf16 %v2665_v10, %v2663_v34 }
 0x2d6   : > { %v2602_v43 = vmul.f32 0.2, %v2450_v26  ;;  %v2454_v60 = vadd.f32 %v2453_v15, %v4846_v24  ;;  %v2455_v56 = vpop.f32.mrb[71].mxu1 }
 0x2d7   : > { %v2603_v53 = vmul.f32 0.2, %v2452_v62  ;;  %v2456_v1 = vadd.f32 %v2455_v56, %v4850_v19  ;;  %2786 = vmatprep.subr.bf16.mxu1 %v2728_v3 }
 0x2d8   : > { %v2604_v37 = vmul.f32 0.2, %v2454_v60  ;;  %2787 = vmatpush1.bf16.xpose.msra.mxu1 %v2727_v23  ;;  %v2666_v13 = vmax.f32 %v2450_v26, %v2602_v43 }
 0x2d9   : > { %v2605_v35 = vmul.f32 0.2, %v2456_v1  ;;  %v2667_v57 = vmax.f32 %v2452_v62, %v2603_v53 }
 0x2da   : > { %v2668_v17 = vmax.f32 %v2454_v60, %v2604_v37 }
 0x2db   : > { %v2669_v36 = vmax.f32 %v2456_v1, %v2605_v35  ;;  %v2459_v58 = vpop.f32.mrb[72].mxu1 }
 0x2dc   : > { %v2729_v38 = vpack.c.bf16 %v2668_v17, %v2666_v13  ;;  %v2460_v39 = vadd.f32 %v2459_v58, %v4846_v24  ;;  %v2461_v16 = vpop.f32.mrb[73].mxu1 }
 0x2dd   : > { %v2462_v6 = vadd.f32 %v2461_v16, %v4850_v19  ;;  %v2463_v2 = vpop.f32.mrb[74].mxu1  ;;  %v2730_v5 = vpack.c.bf16 %v2669_v36, %v2667_v57 }
 0x2de   : > { %v2606_v45 = vmul.f32 0.2, %v2460_v39  ;;  %v2464_v44 = vadd.f32 %v2463_v2, %v4846_v24  ;;  %v2465_v47 = vpop.f32.mrb[75].mxu1 }
 0x2df   : > { %v2607_v41 = vmul.f32 0.2, %v2462_v6  ;;  %v2466_v30 = vadd.f32 %v2465_v47, %v4850_v19  ;;  %2788 = vmatprep.subr.bf16.mxu1 %v2730_v5 }
 0x2e0   : > { %v2608_v18 = vmul.f32 0.2, %v2464_v44  ;;  %2789 = vmatpush1.bf16.xpose.msra.mxu1 %v2729_v38  ;;  %v2670_v14 = vmax.f32 %v2460_v39, %v2606_v45 }
 0x2e1   : > { %v2609_v22 = vmul.f32 0.2, %v2466_v30  ;;  %v2671_v42 = vmax.f32 %v2462_v6, %v2607_v41 }
 0x2e2   : > { %v2672_v27 = vmax.f32 %v2464_v44, %v2608_v18 }
 0x2e3   : > { %v2673_v61 = vmax.f32 %v2466_v30, %v2609_v22  ;;  %v2469_v11 = vpop.f32.mrb[76].mxu1 }
 0x2e4   : > { %v2731_v55 = vpack.c.bf16 %v2672_v27, %v2670_v14  ;;  %v2470_v54 = vadd.f32 %v2469_v11, %v4846_v24  ;;  %v2471_v29 = vpop.f32.mrb[77].mxu1 }
 0x2e5   : > { %v2472_v12 = vadd.f32 %v2471_v29, %v4850_v19  ;;  %v2473_v9 = vpop.f32.mrb[78].mxu1  ;;  %v2732_v48 = vpack.c.bf16 %v2673_v61, %v2671_v42 }
 0x2e6   : > { %v2610_v32 = vmul.f32 0.2, %v2470_v54  ;;  %v2474_v51 = vadd.f32 %v2473_v9, %v4846_v24  ;;  %v2475_v0 = vpop.f32.mrb[79].mxu1 }
 0x2e7   : > { %v2611_v25 = vmul.f32 0.2, %v2472_v12  ;;  %v2476_v33 = vadd.f32 %v2475_v0, %v4850_v19  ;;  %2790 = vmatprep.subr.bf16.mxu1 %v2732_v48 }
 0x2e8   : > { %v2612_v50 = vmul.f32 0.2, %v2474_v51  ;;  %2791 = vmatpush1.bf16.xpose.msra.mxu1 %v2731_v55  ;;  %v2674_v8 = vmax.f32 %v2470_v54, %v2610_v32 }
 0x2e9   : > { %v2613_v4 = vmul.f32 0.2, %v2476_v33  ;;  %v2675_v49 = vmax.f32 %v2472_v12, %v2611_v25 }
 0x2ea   : > { %v2676_v7 = vmax.f32 %v2474_v51, %v2612_v50 }
 0x2eb   : > { %v2677_v20 = vmax.f32 %v2476_v33, %v2613_v4  ;;  %v2479_v28 = vpop.f32.mrb[80].mxu1 }
 0x2ec   : > { %v2733_v31 = vpack.c.bf16 %v2676_v7, %v2674_v8  ;;  %v2480_v52 = vadd.f32 %v2479_v28, %v4846_v24  ;;  %v2481_v34 = vpop.f32.mrb[81].mxu1 }
 0x2ed   : > { %v2482_v10 = vadd.f32 %v2481_v34, %v4850_v19  ;;  %v2483_v21 = vpop.f32.mrb[82].mxu1  ;;  %v2734_v23 = vpack.c.bf16 %v2677_v20, %v2675_v49 }
 0x2ee   : > { %v2614_v26 = vmul.f32 0.2, %v2480_v52  ;;  %v2484_v59 = vadd.f32 %v2483_v21, %v4846_v24  ;;  %v2485_v46 = vpop.f32.mrb[83].mxu1 }
 0x2ef   : > { %v2615_v62 = vmul.f32 0.2, %v2482_v10  ;;  %v2486_v15 = vadd.f32 %v2485_v46, %v4850_v19  ;;  %2792 = vmatprep.subr.bf16.mxu1 %v2734_v23 }
 0x2f0   : > { %v2616_v3 = vmul.f32 0.2, %v2484_v59  ;;  %2793 = vmatpush1.bf16.xpose.msra.mxu1 %v2733_v31  ;;  %v2678_v60 = vmax.f32 %v2480_v52, %v2614_v26 }
 0x2f1   : > { %v2617_v43 = vmul.f32 0.2, %v2486_v15  ;;  %v2679_v53 = vmax.f32 %v2482_v10, %v2615_v62 }
 0x2f2   : > { %v2680_v56 = vmax.f32 %v2484_v59, %v2616_v3 }
 0x2f3   : > { %v2681_v1 = vmax.f32 %v2486_v15, %v2617_v43  ;;  %v2489_v37 = vpop.f32.mrb[84].mxu1 }
 0x2f4   : > { %v2735_v35 = vpack.c.bf16 %v2680_v56, %v2678_v60  ;;  %v2490_v13 = vadd.f32 %v2489_v37, %v4846_v24  ;;  %v2491_v17 = vpop.f32.mrb[85].mxu1 }
 0x2f5   : > { %v2492_v57 = vadd.f32 %v2491_v17, %v4850_v19  ;;  %v2493_v36 = vpop.f32.mrb[86].mxu1  ;;  %v2736_v58 = vpack.c.bf16 %v2681_v1, %v2679_v53 }
 0x2f6   : > { %v2618_v38 = vmul.f32 0.2, %v2490_v13  ;;  %v2494_v39 = vadd.f32 %v2493_v36, %v4846_v24  ;;  %v2495_v16 = vpop.f32.mrb[87].mxu1 }
 0x2f7   : > { %v2619_v6 = vmul.f32 0.2, %v2492_v57  ;;  %v2496_v2 = vadd.f32 %v2495_v16, %v4850_v19  ;;  %2794 = vmatprep.subr.bf16.mxu1 %v2736_v58 }
 0x2f8   : > { %v2620_v5 = vmul.f32 0.2, %v2494_v39  ;;  %2795 = vmatpush1.bf16.xpose.msra.mxu1 %v2735_v35  ;;  %v2682_v44 = vmax.f32 %v2490_v13, %v2618_v38 }
 0x2f9   : > { %v2621_v45 = vmul.f32 0.2, %v2496_v2  ;;  %v2683_v41 = vmax.f32 %v2492_v57, %v2619_v6 }
 0x2fa   : > { %v2684_v47 = vmax.f32 %v2494_v39, %v2620_v5 }
 0x2fb   : > { %v2685_v30 = vmax.f32 %v2496_v2, %v2621_v45  ;;  %v2499_v18 = vpop.f32.mrb[88].mxu1 }
 0x2fc   : > { %v2737_v22 = vpack.c.bf16 %v2684_v47, %v2682_v44  ;;  %v2500_v14 = vadd.f32 %v2499_v18, %v4846_v24  ;;  %v2501_v27 = vpop.f32.mrb[89].mxu1 }
 0x2fd   : > { %v2502_v42 = vadd.f32 %v2501_v27, %v4850_v19  ;;  %v2503_v61 = vpop.f32.mrb[90].mxu1  ;;  %v2738_v11 = vpack.c.bf16 %v2685_v30, %v2683_v41 }
 0x2fe   : > { %v2622_v55 = vmul.f32 0.2, %v2500_v14  ;;  %v2504_v54 = vadd.f32 %v2503_v61, %v4846_v24  ;;  %v2505_v29 = vpop.f32.mrb[91].mxu1 }
 0x2ff   : > { %v2623_v12 = vmul.f32 0.2, %v2502_v42  ;;  %v2506_v9 = vadd.f32 %v2505_v29, %v4850_v19  ;;  %2796 = vmatprep.subr.bf16.mxu1 %v2738_v11 }
 0x300   : > { %v2624_v48 = vmul.f32 0.2, %v2504_v54  ;;  %2797 = vmatpush1.bf16.xpose.msra.mxu1 %v2737_v22  ;;  %v2686_v51 = vmax.f32 %v2500_v14, %v2622_v55 }
 0x301   : > { %v2625_v32 = vmul.f32 0.2, %v2506_v9  ;;  %v2687_v25 = vmax.f32 %v2502_v42, %v2623_v12 }
 0x302   : > { %v2688_v0 = vmax.f32 %v2504_v54, %v2624_v48 }
 0x303   : > { %v2689_v33 = vmax.f32 %v2506_v9, %v2625_v32  ;;  %v2509_v50 = vpop.f32.mrb[92].mxu1 }
 0x304   : > { %v2739_v4 = vpack.c.bf16 %v2688_v0, %v2686_v51  ;;  %v2510_v8 = vadd.f32 %v2509_v50, %v4846_v24  ;;  %v2511_v7 = vpop.f32.mrb[93].mxu1 }
 0x305   : > { %v2512_v49 = vadd.f32 %v2511_v7, %v4850_v19  ;;  %v2513_v20 = vpop.f32.mrb[94].mxu1  ;;  %v2740_v28 = vpack.c.bf16 %v2689_v33, %v2687_v25 }
 0x306   : > { %v2626_v31 = vmul.f32 0.2, %v2510_v8  ;;  %v2514_v52 = vadd.f32 %v2513_v20, %v4846_v24  ;;  %v2515_v34 = vpop.f32.mrb[95].mxu1 }
 0x307   : > { %v2627_v10 = vmul.f32 0.2, %v2512_v49  ;;  %v2516_v21 = vadd.f32 %v2515_v34, %v4850_v19  ;;  %2798 = vmatprep.subr.bf16.mxu1 %v2740_v28 }
 0x308   : > { %v2628_v23 = vmul.f32 0.2, %v2514_v52  ;;  %2799 = vmatpush1.bf16.xpose.msra.mxu1 %v2739_v4  ;;  %v2690_v59 = vmax.f32 %v2510_v8, %v2626_v31 }
 0x309   : > { %v2629_v26 = vmul.f32 0.2, %v2516_v21  ;;  %v2691_v62 = vmax.f32 %v2512_v49, %v2627_v10 }
 0x30a   : > { %v2692_v46 = vmax.f32 %v2514_v52, %v2628_v23 }
 0x30b   : > { %v2693_v15 = vmax.f32 %v2516_v21, %v2629_v26  ;;  %v2519_v3 = vpop.f32.mrb[96].mxu1 }
 0x30c   : > { %v2741_v43 = vpack.c.bf16 %v2692_v46, %v2690_v59  ;;  %v2520_v60 = vadd.f32 %v2519_v3, %v4846_v24  ;;  %v2521_v56 = vpop.f32.mrb[97].mxu1 }
 0x30d   : > { %v2522_v53 = vadd.f32 %v2521_v56, %v4850_v19  ;;  %v2523_v1 = vpop.f32.mrb[98].mxu1  ;;  %v2742_v37 = vpack.c.bf16 %v2693_v15, %v2691_v62 }
 0x30e   : > { %v2630_v35 = vmul.f32 0.2, %v2520_v60  ;;  %v2524_v13 = vadd.f32 %v2523_v1, %v4846_v24  ;;  %v2525_v17 = vpop.f32.mrb[99].mxu1 }
 0x30f   : > { %v2631_v57 = vmul.f32 0.2, %v2522_v53  ;;  %v2526_v36 = vadd.f32 %v2525_v17, %v4850_v19  ;;  %2800 = vmatprep.subr.bf16.mxu1 %v2742_v37 }
 0x310   : > { %v2632_v58 = vmul.f32 0.2, %v2524_v13  ;;  %2801 = vmatpush1.bf16.xpose.msra.mxu1 %v2741_v43  ;;  %v2694_v39 = vmax.f32 %v2520_v60, %v2630_v35 }
 0x311   : > { %v2633_v38 = vmul.f32 0.2, %v2526_v36  ;;  %v2695_v6 = vmax.f32 %v2522_v53, %v2631_v57 }
 0x312   : > { %v2696_v16 = vmax.f32 %v2524_v13, %v2632_v58 }
 0x313   : > { %v2697_v2 = vmax.f32 %v2526_v36, %v2633_v38  ;;  %v2529_v5 = vpop.f32.mrb[100].mxu1 }
 0x314   : > { %v2743_v45 = vpack.c.bf16 %v2696_v16, %v2694_v39  ;;  %v2530_v44 = vadd.f32 %v2529_v5, %v4846_v24  ;;  %v2531_v47 = vpop.f32.mrb[101].mxu1 }
 0x315   : > { %v2532_v41 = vadd.f32 %v2531_v47, %v4850_v19  ;;  %v2533_v30 = vpop.f32.mrb[102].mxu1  ;;  %v2744_v18 = vpack.c.bf16 %v2697_v2, %v2695_v6 }
 0x316   : > { %v2634_v22 = vmul.f32 0.2, %v2530_v44  ;;  %v2534_v14 = vadd.f32 %v2533_v30, %v4846_v24  ;;  %v2535_v27 = vpop.f32.mrb[103].mxu1 }
 0x317   : > { %v2635_v42 = vmul.f32 0.2, %v2532_v41  ;;  %v2536_v61 = vadd.f32 %v2535_v27, %v4850_v19  ;;  %2802 = vmatprep.subr.bf16.mxu1 %v2744_v18 }
 0x318   : > { %v2636_v11 = vmul.f32 0.2, %v2534_v14  ;;  %2803 = vmatpush1.bf16.xpose.msra.mxu1 %v2743_v45  ;;  %v2698_v54 = vmax.f32 %v2530_v44, %v2634_v22 }
 0x319   : > { %v2637_v55 = vmul.f32 0.2, %v2536_v61  ;;  %v2699_v12 = vmax.f32 %v2532_v41, %v2635_v42 }
 0x31a   : > { %v2700_v29 = vmax.f32 %v2534_v14, %v2636_v11 }
 0x31b   : > { %v2701_v9 = vmax.f32 %v2536_v61, %v2637_v55  ;;  %v2539_v48 = vpop.f32.mrb[104].mxu1 }
 0x31c   : > { %v2745_v32 = vpack.c.bf16 %v2700_v29, %v2698_v54  ;;  %v2540_v51 = vadd.f32 %v2539_v48, %v4846_v24  ;;  %v2541_v0 = vpop.f32.mrb[105].mxu1 }
 0x31d   : > { %v2542_v25 = vadd.f32 %v2541_v0, %v4850_v19  ;;  %v2543_v33 = vpop.f32.mrb[106].mxu1  ;;  %v2746_v50 = vpack.c.bf16 %v2701_v9, %v2699_v12 }
 0x31e   : > { %v2638_v4 = vmul.f32 0.2, %v2540_v51  ;;  %v2544_v8 = vadd.f32 %v2543_v33, %v4846_v24  ;;  %v2545_v7 = vpop.f32.mrb[107].mxu1 }
 0x31f   : > { %v2639_v49 = vmul.f32 0.2, %v2542_v25  ;;  %v2546_v20 = vadd.f32 %v2545_v7, %v4850_v19  ;;  %2804 = vmatprep.subr.bf16.mxu1 %v2746_v50 }
 0x320   : > { %v2640_v28 = vmul.f32 0.2, %v2544_v8  ;;  %2805 = vmatpush1.bf16.xpose.msra.mxu1 %v2745_v32  ;;  %v2702_v52 = vmax.f32 %v2540_v51, %v2638_v4 }
 0x321   : > { %v2641_v31 = vmul.f32 0.2, %v2546_v20  ;;  %v2703_v10 = vmax.f32 %v2542_v25, %v2639_v49 }
 0x322   : > { %v2704_v34 = vmax.f32 %v2544_v8, %v2640_v28 }
 0x323   : > { %v2705_v21 = vmax.f32 %v2546_v20, %v2641_v31  ;;  %v2549_v23 = vpop.f32.mrb[108].mxu1 }
 0x324   : > { %v2747_v26 = vpack.c.bf16 %v2704_v34, %v2702_v52  ;;  %v2550_v59 = vadd.f32 %v2549_v23, %v4846_v24  ;;  %v2551_v46 = vpop.f32.mrb[109].mxu1 }
 0x325   : > { %v2552_v62 = vadd.f32 %v2551_v46, %v4850_v19  ;;  %v2553_v15 = vpop.f32.mrb[110].mxu1  ;;  %v2748_v3 = vpack.c.bf16 %v2705_v21, %v2703_v10 }
 0x326   : > { %v2642_v43 = vmul.f32 0.2, %v2550_v59  ;;  %v2554_v60 = vadd.f32 %v2553_v15, %v4846_v24  ;;  %v2555_v56 = vpop.f32.mrb[111].mxu1 }
 0x327   : > { %v2643_v53 = vmul.f32 0.2, %v2552_v62  ;;  %v2556_v1 = vadd.f32 %v2555_v56, %v4850_v19  ;;  %2806 = vmatprep.subr.bf16.mxu1 %v2748_v3 }
 0x328   : > { %v2644_v37 = vmul.f32 0.2, %v2554_v60  ;;  %2807 = vmatpush1.bf16.xpose.msra.mxu1 %v2747_v26  ;;  %v2706_v13 = vmax.f32 %v2550_v59, %v2642_v43 }
 0x329   : > { %v2645_v35 = vmul.f32 0.2, %v2556_v1  ;;  %v2707_v57 = vmax.f32 %v2552_v62, %v2643_v53 }
 0x32a   : > { %v2708_v17 = vmax.f32 %v2554_v60, %v2644_v37 }
 0x32b   : > { %v2709_v36 = vmax.f32 %v2556_v1, %v2645_v35  ;;  %v2559_v58 = vpop.f32.mrb[112].mxu1 }
 0x32c   : > { %v2749_v38 = vpack.c.bf16 %v2708_v17, %v2706_v13  ;;  %v2560_v39 = vadd.f32 %v2559_v58, %v4846_v24  ;;  %v2561_v16 = vpop.f32.mrb[113].mxu1 }
 0x32d   : > { %v2562_v6 = vadd.f32 %v2561_v16, %v4850_v19  ;;  %v2563_v2 = vpop.f32.mrb[114].mxu1  ;;  %v2750_v5 = vpack.c.bf16 %v2709_v36, %v2707_v57 }
 0x32e   : > { %v2646_v45 = vmul.f32 0.2, %v2560_v39  ;;  %v2564_v44 = vadd.f32 %v2563_v2, %v4846_v24  ;;  %v2565_v47 = vpop.f32.mrb[115].mxu1 }
 0x32f   : > { %v2647_v41 = vmul.f32 0.2, %v2562_v6  ;;  %v2566_v30 = vadd.f32 %v2565_v47, %v4850_v19  ;;  %2808 = vmatprep.subr.bf16.mxu1 %v2750_v5 }
 0x330   : > { %v2648_v18 = vmul.f32 0.2, %v2564_v44  ;;  %2809 = vmatpush1.bf16.xpose.msra.mxu1 %v2749_v38  ;;  %v2710_v14 = vmax.f32 %v2560_v39, %v2646_v45 }
 0x331   : > { %v2649_v22 = vmul.f32 0.2, %v2566_v30  ;;  %v2711_v42 = vmax.f32 %v2562_v6, %v2647_v41 }
 0x332   : > { %v2712_v27 = vmax.f32 %v2564_v44, %v2648_v18 }
 0x333   : > { %v2713_v61 = vmax.f32 %v2566_v30, %v2649_v22  ;;  %v2569_v11 = vpop.f32.mrb[116].mxu1 }
 0x334   : > { %v2751_v55 = vpack.c.bf16 %v2712_v27, %v2710_v14  ;;  %v2570_v54 = vadd.f32 %v2569_v11, %v4846_v24  ;;  %v2571_v29 = vpop.f32.mrb[117].mxu1  ;;  %v2776_v14 = vrot.slane %v4859_v40, %v4864_v63 }
 0x335   : > { %v2572_v12 = vadd.f32 %v2571_v29, %v4850_v19  ;;  %v2573_v9 = vpop.f32.mrb[118].mxu1  ;;  %v2752_v48 = vpack.c.bf16 %v2713_v61, %v2711_v42 }
 0x336   : > { %v2650_v32 = vmul.f32 0.2, %v2570_v54  ;;  %v2574_v51 = vadd.f32 %v2573_v9, %v4846_v24  ;;  %v2575_v0 = vpop.f32.mrb[119].mxu1 }
 0x337   : > { %v2651_v25 = vmul.f32 0.2, %v2572_v12  ;;  %v2576_v33 = vadd.f32 %v2575_v0, %v4850_v19  ;;  %2810 = vmatprep.subr.bf16.mxu1 %v2752_v48 }
 0x338   : > { %v2652_v50 = vmul.f32 0.2, %v2574_v51  ;;  %2811 = vmatpush1.bf16.xpose.msra.mxu1 %v2751_v55  ;;  %v2714_v8 = vmax.f32 %v2570_v54, %v2650_v32 }
 0x339   : > { %v2653_v4 = vmul.f32 0.2, %v2576_v33  ;;  %v2715_v49 = vmax.f32 %v2572_v12, %v2651_v25 }
 0x33a   : > { %v2716_v7 = vmax.f32 %v2574_v51, %v2652_v50 }
 0x33b   : > { %v2717_v20 = vmax.f32 %v2576_v33, %v2653_v4  ;;  %v2579_v28 = vpop.f32.mrb[120].mxu1  ;;  %v5026_v33 = vlaneseq }
 0x33c   : > { %v2753_v31 = vpack.c.bf16 %v2716_v7, %v2714_v8  ;;  %v2580_v52 = vadd.f32 %v2579_v28, %v4846_v24  ;;  %v2581_v34 = vpop.f32.mrb[121].mxu1 }
 0x33d   : > { %v2582_v10 = vadd.f32 %v2581_v34, %v4850_v19  ;;  %v2583_v21 = vpop.f32.mrb[122].mxu1  ;;  %v2754_v23 = vpack.c.bf16 %v2717_v20, %v2715_v49  ;;  %vm2859_vm1 = vcmp.lt.s32.totalorder %v5026_v33, 256 }
 0x33e   : > { %v2654_v26 = vmul.f32 0.2, %v2580_v52  ;;  %v2584_v59 = vadd.f32 %v2583_v21, %v4846_v24  ;;  %v2585_v46 = vpop.f32.mrb[123].mxu1 }
 0x33f   : > { %v2655_v62 = vmul.f32 0.2, %v2582_v10  ;;  %v2586_v15 = vadd.f32 %v2585_v46, %v4850_v19  ;;  %2812 = vmatprep.subr.bf16.mxu1 %v2754_v23 }
 0x340   : > { %v2656_v3 = vmul.f32 0.2, %v2584_v59  ;;  %2813 = vmatpush1.bf16.xpose.msra.mxu1 %v2753_v31  ;;  %v2718_v60 = vmax.f32 %v2580_v52, %v2654_v26 }
 0x341   : > { %v2657_v43 = vmul.f32 0.2, %v2586_v15  ;;  %v2719_v53 = vmax.f32 %v2582_v10, %v2655_v62 }
 0x342   : > { %v2720_v56 = vmax.f32 %v2584_v59, %v2656_v3 }
 0x343   : > { %v2721_v1 = vmax.f32 %v2586_v15, %v2657_v43  ;;  %v2589_v37 = vpop.f32.mrb[124].mxu1 }
 0x344   : > { %v2755_v35 = vpack.c.bf16 %v2720_v56, %v2718_v60  ;;  %v2590_v13 = vadd.f32 %v2589_v37, %v4846_v24  ;;  %v2591_v17 = vpop.f32.mrb[125].mxu1 }
 0x345   : > { %v2592_v57 = vadd.f32 %v2591_v17, %v4850_v19  ;;  %v2593_v36 = vpop.f32.mrb[126].mxu1  ;;  %v2756_v58 = vpack.c.bf16 %v2721_v1, %v2719_v53 }
 0x346   : > { %v2658_v38 = vmul.f32 0.2, %v2590_v13  ;;  %v2594_v39 = vadd.f32 %v2593_v36, %v4846_v24  ;;  %v2595_v16 = vpop.f32.mrb[127].mxu1  ;;  %v2760_v24 = vstv %s2759_s15 }
 0x347   : > { %v2659_v6 = vmul.f32 0.2, %v2592_v57  ;;  %v2596_v2 = vadd.f32 %v2595_v16, %v4850_v19  ;;  %2814 = vmatprep.subr.bf16.mxu1 %v2756_v58 }
 0x348   : > { %v2660_v5 = vmul.f32 0.2, %v2594_v39  ;;  %2815 = vmatpush1.bf16.xpose.msra.mxu1 %v2755_v35  ;;  %v2722_v44 = vmax.f32 %v2590_v13, %v2658_v38 }
 0x349   : > { %v2661_v45 = vmul.f32 0.2, %v2596_v2  ;;  %v2723_v41 = vmax.f32 %v2592_v57, %v2659_v6 }
 0x34a   : > { %v2724_v47 = vmax.f32 %v2594_v39, %v2660_v5 }
 0x34b   : > { %v2725_v30 = vmax.f32 %v2596_v2, %v2661_v45 }
 0x34c   : > { %v2757_v18 = vpack.c.bf16 %v2724_v47, %v2722_v44 }
 0x34d   : > { %v2758_v22 = vpack.c.bf16 %v2725_v30, %v2723_v41 }
 0x34f   : > { %2816 = vmatprep.subr.bf16.mxu1 %v2758_v22 }
 0x350   : > { %2817 = vmatpush1.bf16.xpose.msra.mxu1 %v2757_v18 }
 0x357   : > { %2819 = vmatmul.mubr.bf16.vlgmr.msra.gmra.mrb[128].mxu1 %v2776_v14 }
 0x42a   : > { %v2820_v27 = vpop.f32.mrb[128].mxu1 }
 0x42b   : > { %v2821_v19 = vadd.f32 %v2820_v27, %v2760_v24  ;;  %v2822_v42 = vpop.f32.mrb[129].mxu1 }
 0x42c   : > { %v2823_v61 = vadd.f32 %v2822_v42, %v2760_v24  ;;  %v2824_v11 = vpop.f32.mrb[130].mxu1 }
 0x42d   : > { %v3090_v55 = vmul.f32 -1.442695, %v2821_v19  ;;  %v2825_v54 = vpop.f32.mrb[131].mxu1 }
 0x42e   : > { %v3091_v29 = vmul.f32 -1.442695, %v2823_v61 }
 0x42f   : > { %3623 = vpow2.f32 %v3090_v55 }
 0x430   : > { %3625 = vpow2.f32 %v3091_v29 }
 0x439   : > { %v3624_v12 = vpop.eup %3623 }
 0x43a   : > { %v3626_v9 = vpop.eup %3625  ;;  %v2833_v48 = vadd.f32 1.0, %v3624_v12 }
 0x43b   : > { %v2834_v32 = vadd.f32 1.0, %v3626_v9 }
 0x43c   : > { %3627 = vrcp.f32 %v2833_v48 }
 0x43d   : > { %3629 = vrcp.f32 %v2834_v32 }
 0x446   : > { %v3628_v40 = vpop.eup %3627 }
 0x447   : > { %v3630_v51 = vpop.eup %3629 }
 0x448   : > { %v2841_v0 = vcombine.low %v3628_v40, %v3630_v51 }
 0x44a   : > { %v2848_v25 = vrot.slane %v2841_v0, %v4864_v63 }
 0x44c   : > { %v2855_v50 = vrot.slane %v2848_v25, %v4864_v63 }
 0x44e   : > { %2861 = vst.msk [vmem:[%s275_s19] sm:$0x3] %vm2859_vm1, %v2855_v50 }
 0x44f   : > { %3644 = shalt.err (!%p3641_p3)
}
 0x450   : > { %s3645_s24 = scalar_lea.hbm %s4937_s22, 32  ;;  %s3649_s15 = scalar_lea.hbm %s4986_s7, 64 }
 0x451   : > { %p3646_p4 = scmp.ne.s32.totalorder %s4937_s22, %s3645_s24  ;;  %p3650_p9 = scmp.lt.u32.totalorder %s4937_s22, %s4986_s7 }
 0x452   : > { %p3651_p10 = scmp.lt.u32.totalorder %s3649_s15, %s3645_s24  ;;  %p3653_p12 = scmp.lt.u32.totalorder %s3645_s24, %s4937_s22 }
 0x453   : > { %p3647_p7 = pnand %p3646_p4, %p3776_p5 }
 0x454   : > { %p3652_p11 = por %p3651_p10, %p3650_p9 }
 0x455   : > { %p3648_p8 = pneg %p3647_p7 }
 0x456   : > { %p3654_p13 = por %p3653_p12, %p3652_p11 }
 0x458   : > { %p3655_p0 = pnand %p3654_p13, %p3648_p8 }
 0x45a   : > { %3658 = shalt.err (!%p3655_p0)
}
 0x45b   : > { %3387 = dma.vmem_to_hbm [thread:$0]  (%p3776_p5), %s4939_s20, 32, %s4937_s22, %s2863_s25  }
 0x45c PF: > { %p3393_p1 = scmp.ge.s32.totalorder %s3693_s29, 2  ;;  %s2889_s19 = sand.u32 1, %s3681_s26  }
 0x45d   : > { %s2890_s21 = scalar_lea.sflag [#allocation4], %s2889_s19 }
 0x45e   : > { %p3390_p2 = pnand %p3393_p1, %p3780_p6 }
 0x460   : > { %3676 = dma.done.wait (!%p3390_p2), %s2890_s21, 32  }
 0x461   : > { %3678 = vsyncadd (!%p3390_p2), %s2890_s21, 4294967264  ;;  %p18_p3 = scmp.ge.s32.totalorder %s3764_s8, 4   ;;  %s5027_s26 = smov %s3685_s27 }
 0x462   : > { %s5028_s27 = smov %s3689_s28  ;;  %s5029_s28 = smov %s3774_s11 }
 0x463   : > { %s5030_s29 = smov %s3764_s8  ;;  %20 = sbr.rel (!%p18_p3) target bundleno = 5 (0x5), region = 83 }
 0x46a   :  { %2895 = vsyncpa [#allocation4], 1 }
 0x46b   :  { %2897 = vsyncpa [#allocation4 + $0x1], 1 }

</bundles_post_ra>
